<compile_context>
chip_gen: v5e
topology: v5e:2x2
jax: 0.10.0
libtpu: 0.0.40
codegen_flags: <defaults>
</compile_context>

<pallas_src>
import functools

import numpy as np

import jax
import jax.numpy as jnp
from jax.experimental import pallas as pl
from jax.experimental.pallas import tpu as pltpu

PAD = 128  # lane-dense padded width for features / hidden / hidden//2 / classes


# ----------------------------------------------------------------------------
# Fused kernel: grid axis 0 = branch (0: sc, 1: fc), "arbitrary" (step 1
# depends on step 0 through the pooled-sc VMEM scratch).
# Per layer (GINConv(train_eps) -> Linear/ReLU/Linear/ReLU/BN -> outer relu),
# with BN pre-folded into scale/shift:
#   h = (1+eps)*h + A @ h
#   h = relu(h @ W1 + b1) ; h = relu(h @ W2 + b2)
#   h = relu(h * bn_scale + bn_shift)
# Pooling: contiguous-segment sum.  Head + contrastive loss at the last step.
# ----------------------------------------------------------------------------
def gin_fused_kernel(eps_ref, x_ref, adj_ref, w1_ref, w2_ref, vec_ref,
                     hw1_ref, hw2_ref, hw3_ref, hb_ref,
                     out_ref, sc_pool_ref, *,
                     num_layers, num_graphs, nodes_per_graph,
                     num_classes, temperature, negative_w):
    g = pl.program_id(0)

    # ---- GIN branch for this grid step ----
    adj = adj_ref[...]                          # bf16 [N, N]
    h = x_ref[...]                              # f32 [N, PAD]
    for l in range(num_layers):                 # static unroll (tiny)
        v = vec_ref[l]                          # f32 [8, PAD]: b1, b2, scale, shift
        one_plus_eps = 1.0 + eps_ref[g, l]      # SMEM scalar read
        agg = jnp.dot(adj, h.astype(jnp.bfloat16),
                      preferred_element_type=jnp.float32)
        z = h * one_plus_eps + agg              # (1+eps)*h + sum_{j in N(i)} h_j
        z = jnp.maximum(
            jnp.dot(z.astype(jnp.bfloat16), w1_ref[l],
                    preferred_element_type=jnp.float32) + v[0:1, :], 0.0)
        z = jnp.maximum(
            jnp.dot(z.astype(jnp.bfloat16), w2_ref[l],
                    preferred_element_type=jnp.float32) + v[1:2, :], 0.0)
        z = z * v[2:3, :] + v[3:4, :]           # BatchNorm1d (eval, folded)
        h = jnp.maximum(z, 0.0)                 # outer F.relu in forward()

    # global_add_pool: graphs are contiguous equal-size segments -> VPU sum.
    pooled = jnp.sum(
        h.reshape(num_graphs, nodes_per_graph, h.shape[-1]), axis=1)

    @pl.when(g == 0)
    def _():
        sc_pool_ref[...] = pooled               # park sc branch in VMEM scratch

    @pl.when(g == pl.num_programs(0) - 1)
    def _():
        sc_p = sc_pool_ref[...]                 # f32 [B, PAD]
        fc_p = pooled                           # f32 [B, PAD]
        bias = hb_ref[...]                      # f32 [8, PAD]: rows b1, b2, b3

        # fc_forward (dropout = no-op in eval); fc1 acts on cat([sc_p, fc_p]).
        h1 = (jnp.dot(sc_p.astype(jnp.bfloat16), hw1_ref[0],
                      preferred_element_type=jnp.float32)
              + jnp.dot(fc_p.astype(jnp.bfloat16), hw1_ref[1],
                        preferred_element_type=jnp.float32)
              + bias[0:1, :])
        h1 = jnp.maximum(h1, 0.0)
        h1 = jnp.maximum(
            jnp.dot(h1.astype(jnp.bfloat16), hw2_ref[...],
                    preferred_element_type=jnp.float32) + bias[1:2, :], 0.0)
        logits = jnp.dot(h1.astype(jnp.bfloat16), hw3_ref[...],
                         preferred_element_type=jnp.float32) + bias[2:3, :]

        # Mask padded class lanes (f32 math: -1e30 must not be cast to bf16).
        lane = jax.lax.broadcasted_iota(jnp.int32, logits.shape, 1)
        logits = jnp.where(lane < num_classes, logits, jnp.float32(-1e30))

        def log_softmax(z):
            m = jnp.max(z, axis=-1, keepdims=True)
            return z - m - jnp.log(jnp.sum(jnp.exp(z - m), axis=-1, keepdims=True))

        # fc_forward applies log_softmax, forward() applies it AGAIN -> twice.
        logp = log_softmax(log_softmax(logits))

        # --- contrastive part (kept in f32: precision critical, tiny MXU cost) ---
        def l2norm(v_):
            ss = jnp.sum(v_ * v_, axis=1, keepdims=True)
            return v_ * jax.lax.rsqrt(jnp.maximum(ss, 1e-24))

        sc_n = l2norm(sc_p)
        fc_n = l2norm(fc_p)
        inv_t = jnp.float32(1.0 / temperature)

        def matT(a, b):                          # a @ b.T without transpose
            return jax.lax.dot_general(a, b, (((1,), (1,)), ((), ())),
                                       preferred_element_type=jnp.float32)

        logits_per_sc = matT(sc_n, fc_n) * inv_t
        logits_per_fc = logits_per_sc.T          # == (fc_n @ sc_n.T)/T
        clstr_sc = matT(sc_n, sc_n) * inv_t
        clstr_fc = matT(fc_n, fc_n) * inv_t

        bsz = num_graphs
        row = jax.lax.broadcasted_iota(jnp.int32, (bsz, bsz), 0)
        col = jax.lax.broadcasted_iota(jnp.int32, (bsz, bsz), 1)
        eye = (row == col).astype(jnp.float32)

        neg_sc = clstr_sc * (1.0 - eye) * negative_w
        neg_fc = clstr_fc * (1.0 - eye) * negative_w

        def info_nce(pos, neg):
            # == -log((softmax(cat([pos, neg], 1), 1) * cat([eye, 0], 1)).sum(1))
            m = jnp.maximum(jnp.max(pos, axis=1, keepdims=True),
                            jnp.max(neg, axis=1, keepdims=True))
            denom = (jnp.sum(jnp.exp(pos - m), axis=1, keepdims=True)
                     + jnp.sum(jnp.exp(neg - m), axis=1, keepdims=True))
            diag = jnp.sum(pos * eye, axis=1, keepdims=True)
            return -(diag - m - jnp.log(denom))

        loss_i = info_nce(logits_per_sc, neg_sc)
        loss_t = info_nce(logits_per_fc, neg_fc)

        out_ref[...] = logp + 0.5 * (jnp.mean(loss_i) + jnp.mean(loss_t))


def run_gin(eps, x, adj, w1, w2, vec, hw1, hw2, hw3, hb, *,
            num_graphs, nodes_per_graph, num_classes, temperature, negative_w):
    """eps:[2,L] x:[2,N,PAD] adj:[2,N,N] w1,w2:[2,L,PAD,PAD] vec:[2,L,8,PAD]
       hw1:[2,PAD,PAD] hw2,hw3:[PAD,PAD] hb:[8,PAD]."""
    nb, n, fp = x.shape
    num_layers = w1.shape[1]
    hp = w2.shape[-1]
    b = num_graphs
    assert n == num_graphs * nodes_per_graph

    operands = (eps, x, adj, w1, w2, vec, hw1, hw2, hw3, hb)
    bytes_accessed = sum(int(a.size) * a.dtype.itemsize for a in operands) + b * hp * 4
    flops = (nb * num_layers * (2 * n * n * hp + 4 * n * hp * hp)   # branches
             + 8 * b * hp * hp                                      # fc1/fc2/fc3
             + 6 * b * b * hp)                                      # contrastive
    transcendentals = 2 * b * hp + 4 * b * b + 8 * b

    kernel = functools.partial(
        gin_fused_kernel, num_layers=num_layers, num_graphs=num_graphs,
        nodes_per_graph=nodes_per_graph, num_classes=num_classes,
        temperature=temperature, negative_w=negative_w)

    return pl.pallas_call(
        kernel,
        out_shape=jax.ShapeDtypeStruct((b, hp), jnp.float32),
        grid=(nb,),
        in_specs=[
            pl.BlockSpec(memory_space=pltpu.MemorySpace.SMEM),          # eps
            pl.BlockSpec((None, n, fp), lambda g: (g, 0, 0)),           # x
            pl.BlockSpec((None, n, n), lambda g: (g, 0, 0)),            # adj
            pl.BlockSpec((None, num_layers, fp, hp), lambda g: (g, 0, 0, 0)),  # w1
            pl.BlockSpec((None, num_layers, hp, hp), lambda g: (g, 0, 0, 0)),  # w2
            pl.BlockSpec((None, num_layers, 8, hp), lambda g: (g, 0, 0, 0)),   # vec
            pl.BlockSpec((2, hp, hp), lambda g: (0, 0, 0)),             # hw1
            pl.BlockSpec((hp, hp), lambda g: (0, 0)),                   # hw2
            pl.BlockSpec((hp, hp), lambda g: (0, 0)),                   # hw3
            pl.BlockSpec((8, hp), lambda g: (0, 0)),                    # hb
        ],
        out_specs=pl.BlockSpec((b, hp), lambda g: (0, 0)),
        scratch_shapes=[pltpu.VMEM((b, hp), jnp.float32)],              # pooled sc
        compiler_params=pltpu.CompilerParams(
            dimension_semantics=("arbitrary",)),
        cost_estimate=pl.CostEstimate(
            flops=int(flops), transcendentals=int(transcendentals),
            bytes_accessed=int(bytes_accessed)),
    )(*operands)


@functools.partial(jax.jit,
                   static_argnames=("num_graphs", "nodes_per_graph",
                                    "num_classes", "temperature", "negative_w"))
def gin_forward(eps, x, adj, w1, w2, vec, hw1, hw2, hw3, hb, *,
                num_graphs, nodes_per_graph, num_classes, temperature,
                negative_w):
    out = run_gin(eps, x, adj, w1, w2, vec, hw1, hw2, hw3, hb,
                  num_graphs=num_graphs, nodes_per_graph=nodes_per_graph,
                  num_classes=num_classes, temperature=temperature,
                  negative_w=negative_w)
    return out[:, :num_classes]                 # drop padded class lanes


# ----------------------------------------------------------------------------
# Parameter construction (mirrors the torch module __init__), plus host-side
# BN folding / lane padding / bf16 weight packing for the kernel.
# ----------------------------------------------------------------------------
def linear_params(key, fan_in, fan_out):
    k1, k2 = jax.random.split(key)
    bound = 1.0 / float(np.sqrt(fan_in))
    w = jax.random.uniform(k1, (fan_in, fan_out), jnp.float32, -bound, bound)
    b = jax.random.uniform(k2, (1, fan_out), jnp.float32, -bound, bound)
    return w, b


def gin_layer_params(key, in_dim, hidden):
    k1, k2 = jax.random.split(key)
    w1, b1 = linear_params(k1, in_dim, hidden)
    w2, b2 = linear_params(k2, hidden, hidden)
    return {
        "eps": jnp.zeros((), jnp.float32),            # train_eps=True, init 0
        "w1": w1, "b1": b1, "w2": w2, "b2": b2,
        "gamma": jnp.ones((hidden,), jnp.float32),    # BatchNorm1d defaults
        "beta": jnp.zeros((hidden,), jnp.float32),
        "rmean": jnp.zeros((hidden,), jnp.float32),
        "rvar": jnp.ones((hidden,), jnp.float32),
    }


def head_layer_params(keys, hidden, num_classes):
    w1, b1 = linear_params(keys[0], 2 * hidden, hidden)
    w2, b2 = linear_params(keys[1], hidden, hidden // 2)
    w3, b3 = linear_params(keys[2], hidden // 2, num_classes)
    return {"w1": w1, "b1": b1, "w2": w2, "b2": b2, "w3": w3, "b3": b3}


def pad2d(a, rows, cols):
    return jnp.pad(a, ((0, rows - a.shape[0]), (0, cols - a.shape[1])))


def pack_branch(layers, pad):
    """Zero-pad to lane width, fold BN (eval), bf16 weights, pack vectors."""
    w1 = jnp.stack([pad2d(p["w1"], pad, pad) for p in layers]).astype(jnp.bfloat16)
    w2 = jnp.stack([pad2d(p["w2"], pad, pad) for p in layers]).astype(jnp.bfloat16)
    vecs = []
    for p in layers:
        hidden = p["w2"].shape[1]
        scale = p["gamma"] * jax.lax.rsqrt(p["rvar"] + 1e-5)
        shift = p["beta"] - p["rmean"] * scale
        v = jnp.zeros((8, pad), jnp.float32)
        v = v.at[0, :hidden].set(p["b1"][0])
        v = v.at[1, :hidden].set(p["b2"][0])
        v = v.at[2, :hidden].set(scale)
        v = v.at[3, :hidden].set(shift)
        vecs.append(v)
    eps = jnp.stack([p["eps"] for p in layers])
    return w1, w2, jnp.stack(vecs), eps


def pack_head(hp_, hidden, num_classes, pad):
    hw1 = jnp.stack([pad2d(hp_["w1"][:hidden], pad, pad),    # sc half of cat
                     pad2d(hp_["w1"][hidden:], pad, pad)]    # fc half of cat
                    ).astype(jnp.bfloat16)
    hw2 = pad2d(hp_["w2"], pad, pad).astype(jnp.bfloat16)
    hw3 = pad2d(hp_["w3"], pad, pad).astype(jnp.bfloat16)
    hb = jnp.zeros((8, pad), jnp.float32)
    hb = hb.at[0, :hidden].set(hp_["b1"][0])
    hb = hb.at[1, :hidden // 2].set(hp_["b2"][0])
    hb = hb.at[2, :num_classes].set(hp_["b3"][0])
    return hw1, hw2, hw3, hb


def build_ring_adj(num_graphs, nodes_per_graph, step):
    """Dense A[i, j] = #edges j->i for a batch of undirected ring graphs."""
    n = num_graphs * nodes_per_graph
    a = np.zeros((n, n), np.float32)
    for g in range(num_graphs):
        base = g * nodes_per_graph
        for i in range(nodes_per_graph):
            j = (i + step) % nodes_per_graph
            a[base + i, base + j] += 1.0
            a[base + j, base + i] += 1.0
    return jnp.asarray(a)


def build_pool(num_graphs, nodes_per_graph):
    p = np.zeros((num_graphs, num_graphs * nodes_per_graph), np.float32)
    for b in range(num_graphs):
        p[b, b * nodes_per_graph:(b + 1) * nodes_per_graph] = 1.0
    return jnp.asarray(p)


# ----------------------------------------------------------------------------
# Pure-JAX f32 reference (straight transcription of the torch forward, eval).
# ----------------------------------------------------------------------------
def reference_forward(sc_x, fc_x, sc_adj, fc_adj, pool, sc_layers, fc_layers,
                      hp, temperature, negative_w):
    def branch(x, adj, layers):
        h = x
        for p in layers:
            z = (1.0 + p["eps"]) * h + adj @ h
            z = jax.nn.relu(z @ p["w1"] + p["b1"])
            z = jax.nn.relu(z @ p["w2"] + p["b2"])
            z = (z - p["rmean"]) * jax.lax.rsqrt(p["rvar"] + 1e-5) * p["gamma"] + p["beta"]
            h = jax.nn.relu(z)
        return pool @ h

    sc_p = branch(sc_x, sc_adj, sc_layers)
    fc_p = branch(fc_x, fc_adj, fc_layers)
    x = jnp.concatenate([sc_p, fc_p], axis=1)
    x = jax.nn.relu(x @ hp["w1"] + hp["b1"])
    x = jax.nn.relu(x @ hp["w2"] + hp["b2"])
    x = jax.nn.log_softmax(x @ hp["w3"] + hp["b3"], axis=-1)
    x = jax.nn.log_softmax(x, axis=-1)

    def l2n(v):
        return v / jnp.maximum(jnp.linalg.norm(v, axis=1, keepdims=True), 1e-12)

    sc_n, fc_n = l2n(sc_p), l2n(fc_p)
    lps = sc_n @ fc_n.T / temperature
    lpf = fc_n @ sc_n.T / temperature
    cs = sc_n @ sc_n.T / temperature
    cf = fc_n @ fc_n.T / temperature
    bsz = sc_n.shape[0]
    eye = jnp.eye(bsz, dtype=jnp.float32)
    sc_logits = jnp.concatenate([lps, negative_w * (cs * (1.0 - eye))], axis=1)
    fc_logits = jnp.concatenate([lpf, negative_w * (cf * (1.0 - eye))], axis=1)
    mask = jnp.concatenate([eye, jnp.zeros((bsz, bsz), jnp.float32)], axis=1)
    loss_i = -jnp.log((jax.nn.softmax(sc_logits, axis=1) * mask).sum(1))
    loss_t = -jnp.log((jax.nn.softmax(fc_logits, axis=1) * mask).sum(1))
    return x + (loss_i.mean() + loss_t.mean()) / 2.0


if __name__ == "__main__":
    # module hyper-parameters (args)
    num_graphs = 2           # batch size (number of graphs)
    nodes_per_graph = 8
    sc_features = 8
    fc_features = 8
    hidden = 32
    num_layers = 2
    num_classes = 4
    temperature = 0.5
    negative_w = 0.8
    # dropout: no-op in eval mode.

    assert max(sc_features, fc_features, hidden, hidden // 2, num_classes) <= PAD
    n_nodes = num_graphs * nodes_per_graph
    assert n_nodes % 8 == 0   # contiguous-segment pooling, no node padding needed

    key = jax.random.PRNGKey(0)
    k_sc, k_fc, k_par = jax.random.split(key, 3)

    sc_x = jax.random.normal(k_sc, (n_nodes, sc_features), jnp.float32)
    fc_x = jax.random.normal(k_fc, (n_nodes, fc_features), jnp.float32)
    sc_adj = build_ring_adj(num_graphs, nodes_per_graph, step=1)
    fc_adj = build_ring_adj(num_graphs, nodes_per_graph, step=2)
    pool = build_pool(num_graphs, nodes_per_graph)   # reference only

    keys = jax.random.split(k_par, 2 * num_layers + 3)
    sc_layers = [gin_layer_params(keys[0], sc_features, hidden)]
    sc_layers += [gin_layer_params(keys[1 + i], hidden, hidden)
                  for i in range(num_layers - 1)]
    fc_layers = [gin_layer_params(keys[num_layers], fc_features, hidden)]
    fc_layers += [gin_layer_params(keys[num_layers + 1 + i], hidden, hidden)
                  for i in range(num_layers - 1)]
    head_p = head_layer_params(keys[-3:], hidden, num_classes)

    # ---- pack / pad / bf16-cast for the kernel ----
    sc_w1, sc_w2, sc_vec, sc_eps = pack_branch(sc_layers, PAD)
    fc_w1, fc_w2, fc_vec, fc_eps = pack_branch(fc_layers, PAD)
    w1 = jnp.stack([sc_w1, fc_w1])                  # [2, L, PAD, PAD] bf16
    w2 = jnp.stack([sc_w2, fc_w2])                  # [2, L, PAD, PAD] bf16
    vec = jnp.stack([sc_vec, fc_vec])               # [2, L, 8, PAD] f32
    eps = jnp.stack([sc_eps, fc_eps]).astype(jnp.float32)   # [2, L] (SMEM)
    hw1, hw2, hw3, hb = pack_head(head_p, hidden, num_classes, PAD)

    x_stacked = jnp.stack([pad2d(sc_x, n_nodes, PAD), pad2d(fc_x, n_nodes, PAD)])
    adj_stacked = jnp.stack([sc_adj, fc_adj]).astype(jnp.bfloat16)  # exact 0/1/2

    out = gin_forward(eps, x_stacked, adj_stacked, w1, w2, vec,
                      hw1, hw2, hw3, hb,
                      num_graphs=num_graphs, nodes_per_graph=nodes_per_graph,
                      num_classes=num_classes, temperature=temperature,
                      negative_w=negative_w)
    out = jax.block_until_ready(out)

    assert out.shape == (num_graphs, num_classes)
    assert bool(jnp.all(jnp.isfinite(out)))

    ref = reference_forward(sc_x, fc_x, sc_adj, fc_adj, pool,
                            sc_layers, fc_layers, head_p,
                            temperature, negative_w)
    # Tolerance widened slightly vs. the f32 path: kernel uses bf16 MXU
    # operands (f32 accumulation) per the performance review.
    assert bool(jnp.allclose(out, ref, atol=2e-2, rtol=2e-2)), (out, ref)

    print("KERNEL_OK")
</pallas_src>

<mosaic_0001>
module attributes {stable_mosaic.version = 11 : i64} {
  func.func @gin_fused_kernel(%arg0: i32, %arg1: memref<2x2xf32, #tpu.memory_space<smem>>, %arg2: memref<1x16x128xf32, #tpu.memory_space<vmem>>, %arg3: memref<1x16x16xbf16, #tpu.memory_space<vmem>>, %arg4: memref<1x2x128x128xbf16, #tpu.memory_space<vmem>>, %arg5: memref<1x2x128x128xbf16, #tpu.memory_space<vmem>>, %arg6: memref<1x2x8x128xf32, #tpu.memory_space<vmem>>, %arg7: memref<2x128x128xbf16, #tpu.memory_space<vmem>>, %arg8: memref<128x128xbf16, #tpu.memory_space<vmem>>, %arg9: memref<128x128xbf16, #tpu.memory_space<vmem>>, %arg10: memref<8x128xf32, #tpu.memory_space<vmem>>, %arg11: memref<2x128xf32, #tpu.memory_space<vmem>>, %arg12: memref<2x128xf32, #tpu.memory_space<vmem>>) attributes {dimension_semantics = [#tpu.dimension_semantics<arbitrary>], iteration_bounds = array<i64: 2>, scalar_prefetch = 0 : i64, scratch_operands = 1 : i64, tpu.core_type = #tpu.core_type<tc>, window_params = [{transform_indices = @transform_0, window_bounds = array<i64: 2, 2>}, {transform_indices = @transform_1, window_bounds = array<i64: 1, 16, 128>}, {transform_indices = @transform_2, window_bounds = array<i64: 1, 16, 16>}, {transform_indices = @transform_3, window_bounds = array<i64: 1, 2, 128, 128>}, {transform_indices = @transform_4, window_bounds = array<i64: 1, 2, 128, 128>}, {transform_indices = @transform_5, window_bounds = array<i64: 1, 2, 8, 128>}, {pipeline_mode = #tpu.pipeline_mode<synchronous>, transform_indices = @transform_6, window_bounds = array<i64: 2, 128, 128>}, {pipeline_mode = #tpu.pipeline_mode<synchronous>, transform_indices = @transform_7, window_bounds = array<i64: 128, 128>}, {pipeline_mode = #tpu.pipeline_mode<synchronous>, transform_indices = @transform_8, window_bounds = array<i64: 128, 128>}, {pipeline_mode = #tpu.pipeline_mode<synchronous>, transform_indices = @transform_9, window_bounds = array<i64: 8, 128>}, {pipeline_mode = #tpu.pipeline_mode<synchronous>, transform_indices = @transform_10, window_bounds = array<i64: 2, 128>}]} {
    %c0 = arith.constant 0 : index
    %c0_0 = arith.constant 0 : index
    %c0_1 = arith.constant 0 : index
    %0 = vector.load %arg3[%c0, %c0_0, %c0_1] : memref<1x16x16xbf16, #tpu.memory_space<vmem>>, vector<1x16x16xbf16>
    %1 = vector.shape_cast %0 : vector<1x16x16xbf16> to vector<16x16xbf16>
    %c0_2 = arith.constant 0 : index
    %c0_3 = arith.constant 0 : index
    %c0_4 = arith.constant 0 : index
    %2 = vector.load %arg2[%c0_2, %c0_3, %c0_4] : memref<1x16x128xf32, #tpu.memory_space<vmem>>, vector<1x16x128xf32>
    %3 = vector.shape_cast %2 : vector<1x16x128xf32> to vector<16x128xf32>
    %c0_5 = arith.constant 0 : index
    %c0_6 = arith.constant 0 : index
    %c0_7 = arith.constant 0 : index
    %c0_8 = arith.constant 0 : index
    %4 = vector.load %arg6[%c0_5, %c0_6, %c0_7, %c0_8] : memref<1x2x8x128xf32, #tpu.memory_space<vmem>>, vector<1x1x8x128xf32>
    %5 = vector.shape_cast %4 : vector<1x1x8x128xf32> to vector<8x128xf32>
    %6 = arith.index_cast %arg0 : i32 to index
    %c0_9 = arith.constant 0 : index
    %7 = memref.load %arg1[%6, %c0_9] : memref<2x2xf32, #tpu.memory_space<smem>>
    %cst = arith.constant 1.000000e+00 : f32
    %8 = arith.addf %cst, %7 : f32
    %9 = arith.truncf %3 : vector<16x128xf32> to vector<16x128xbf16>
    %cst_10 = arith.constant dense<0.000000e+00> : vector<16x128xf32>
    %10 = tpu.matmul %1, %9, %cst_10 {dimension_numbers = #tpu.dot_dimension_numbers<[1], [0], [0], [1], [0, 0, 1, 1], [], []>} : vector<16x16xbf16>, vector<16x128xbf16>, vector<16x128xf32> -> vector<16x128xf32>
    %11 = vector.broadcast %8 : f32 to vector<16x128xf32>
    %12 = arith.mulf %3, %11 : vector<16x128xf32>
    %13 = arith.addf %12, %10 : vector<16x128xf32>
    %14 = arith.truncf %13 : vector<16x128xf32> to vector<16x128xbf16>
    %c0_11 = arith.constant 0 : index
    %c0_12 = arith.constant 0 : index
    %c0_13 = arith.constant 0 : index
    %c0_14 = arith.constant 0 : index
    %15 = vector.load %arg4[%c0_11, %c0_12, %c0_13, %c0_14] : memref<1x2x128x128xbf16, #tpu.memory_space<vmem>>, vector<1x1x128x128xbf16>
    %16 = vector.shape_cast %15 : vector<1x1x128x128xbf16> to vector<128x128xbf16>
    %cst_15 = arith.constant dense<0.000000e+00> : vector<16x128xf32>
    %17 = tpu.matmul %14, %16, %cst_15 {dimension_numbers = #tpu.dot_dimension_numbers<[1], [0], [0], [1], [0, 0, 1, 1], [], []>} : vector<16x128xbf16>, vector<128x128xbf16>, vector<16x128xf32> -> vector<16x128xf32>
    %18 = vector.extract_strided_slice %5 {offsets = [0, 0], sizes = [1, 128], strides = [1, 1]} : vector<8x128xf32> to vector<1x128xf32>
    %19 = vector.broadcast %18 : vector<1x128xf32> to vector<16x128xf32>
    %20 = arith.addf %17, %19 : vector<16x128xf32>
    %cst_16 = arith.constant 0.000000e+00 : f32
    %21 = vector.broadcast %cst_16 : f32 to vector<16x128xf32>
    %22 = arith.maximumf %20, %21 : vector<16x128xf32>
    %23 = arith.truncf %22 : vector<16x128xf32> to vector<16x128xbf16>
    %c0_17 = arith.constant 0 : index
    %c0_18 = arith.constant 0 : index
    %c0_19 = arith.constant 0 : index
    %c0_20 = arith.constant 0 : index
    %24 = vector.load %arg5[%c0_17, %c0_18, %c0_19, %c0_20] : memref<1x2x128x128xbf16, #tpu.memory_space<vmem>>, vector<1x1x128x128xbf16>
    %25 = vector.shape_cast %24 : vector<1x1x128x128xbf16> to vector<128x128xbf16>
    %cst_21 = arith.constant dense<0.000000e+00> : vector<16x128xf32>
    %26 = tpu.matmul %23, %25, %cst_21 {dimension_numbers = #tpu.dot_dimension_numbers<[1], [0], [0], [1], [0, 0, 1, 1], [], []>} : vector<16x128xbf16>, vector<128x128xbf16>, vector<16x128xf32> -> vector<16x128xf32>
    %27 = vector.extract_strided_slice %5 {offsets = [1, 0], sizes = [1, 128], strides = [1, 1]} : vector<8x128xf32> to vector<1x128xf32>
    %28 = vector.broadcast %27 : vector<1x128xf32> to vector<16x128xf32>
    %29 = arith.addf %26, %28 : vector<16x128xf32>
    %cst_22 = arith.constant 0.000000e+00 : f32
    %30 = vector.broadcast %cst_22 : f32 to vector<16x128xf32>
    %31 = arith.maximumf %29, %30 : vector<16x128xf32>
    %32 = vector.extract_strided_slice %5 {offsets = [2, 0], sizes = [1, 128], strides = [1, 1]} : vector<8x128xf32> to vector<1x128xf32>
    %33 = vector.broadcast %32 : vector<1x128xf32> to vector<16x128xf32>
    %34 = arith.mulf %31, %33 : vector<16x128xf32>
    %35 = vector.extract_strided_slice %5 {offsets = [3, 0], sizes = [1, 128], strides = [1, 1]} : vector<8x128xf32> to vector<1x128xf32>
    %36 = vector.broadcast %35 : vector<1x128xf32> to vector<16x128xf32>
    %37 = arith.addf %34, %36 : vector<16x128xf32>
    %cst_23 = arith.constant 0.000000e+00 : f32
    %38 = vector.broadcast %cst_23 : f32 to vector<16x128xf32>
    %39 = arith.maximumf %37, %38 : vector<16x128xf32>
    %c0_24 = arith.constant 0 : index
    %c1 = arith.constant 1 : index
    %c0_25 = arith.constant 0 : index
    %c0_26 = arith.constant 0 : index
    %40 = vector.load %arg6[%c0_24, %c1, %c0_25, %c0_26] : memref<1x2x8x128xf32, #tpu.memory_space<vmem>>, vector<1x1x8x128xf32>
    %41 = vector.shape_cast %40 : vector<1x1x8x128xf32> to vector<8x128xf32>
    %42 = arith.index_cast %arg0 : i32 to index
    %c1_27 = arith.constant 1 : index
    %43 = memref.load %arg1[%42, %c1_27] : memref<2x2xf32, #tpu.memory_space<smem>>
    %cst_28 = arith.constant 1.000000e+00 : f32
    %44 = arith.addf %cst_28, %43 : f32
    %45 = arith.truncf %39 : vector<16x128xf32> to vector<16x128xbf16>
    %cst_29 = arith.constant dense<0.000000e+00> : vector<16x128xf32>
    %46 = tpu.matmul %1, %45, %cst_29 {dimension_numbers = #tpu.dot_dimension_numbers<[1], [0], [0], [1], [0, 0, 1, 1], [], []>} : vector<16x16xbf16>, vector<16x128xbf16>, vector<16x128xf32> -> vector<16x128xf32>
    %47 = vector.broadcast %44 : f32 to vector<16x128xf32>
    %48 = arith.mulf %39, %47 : vector<16x128xf32>
    %49 = arith.addf %48, %46 : vector<16x128xf32>
    %50 = arith.truncf %49 : vector<16x128xf32> to vector<16x128xbf16>
    %c0_30 = arith.constant 0 : index
    %c1_31 = arith.constant 1 : index
    %c0_32 = arith.constant 0 : index
    %c0_33 = arith.constant 0 : index
    %51 = vector.load %arg4[%c0_30, %c1_31, %c0_32, %c0_33] : memref<1x2x128x128xbf16, #tpu.memory_space<vmem>>, vector<1x1x128x128xbf16>
    %52 = vector.shape_cast %51 : vector<1x1x128x128xbf16> to vector<128x128xbf16>
    %cst_34 = arith.constant dense<0.000000e+00> : vector<16x128xf32>
    %53 = tpu.matmul %50, %52, %cst_34 {dimension_numbers = #tpu.dot_dimension_numbers<[1], [0], [0], [1], [0, 0, 1, 1], [], []>} : vector<16x128xbf16>, vector<128x128xbf16>, vector<16x128xf32> -> vector<16x128xf32>
    %54 = vector.extract_strided_slice %41 {offsets = [0, 0], sizes = [1, 128], strides = [1, 1]} : vector<8x128xf32> to vector<1x128xf32>
    %55 = vector.broadcast %54 : vector<1x128xf32> to vector<16x128xf32>
    %56 = arith.addf %53, %55 : vector<16x128xf32>
    %cst_35 = arith.constant 0.000000e+00 : f32
    %57 = vector.broadcast %cst_35 : f32 to vector<16x128xf32>
    %58 = arith.maximumf %56, %57 : vector<16x128xf32>
    %59 = arith.truncf %58 : vector<16x128xf32> to vector<16x128xbf16>
    %c0_36 = arith.constant 0 : index
    %c1_37 = arith.constant 1 : index
    %c0_38 = arith.constant 0 : index
    %c0_39 = arith.constant 0 : index
    %60 = vector.load %arg5[%c0_36, %c1_37, %c0_38, %c0_39] : memref<1x2x128x128xbf16, #tpu.memory_space<vmem>>, vector<1x1x128x128xbf16>
    %61 = vector.shape_cast %60 : vector<1x1x128x128xbf16> to vector<128x128xbf16>
    %cst_40 = arith.constant dense<0.000000e+00> : vector<16x128xf32>
    %62 = tpu.matmul %59, %61, %cst_40 {dimension_numbers = #tpu.dot_dimension_numbers<[1], [0], [0], [1], [0, 0, 1, 1], [], []>} : vector<16x128xbf16>, vector<128x128xbf16>, vector<16x128xf32> -> vector<16x128xf32>
    %63 = vector.extract_strided_slice %41 {offsets = [1, 0], sizes = [1, 128], strides = [1, 1]} : vector<8x128xf32> to vector<1x128xf32>
    %64 = vector.broadcast %63 : vector<1x128xf32> to vector<16x128xf32>
    %65 = arith.addf %62, %64 : vector<16x128xf32>
    %cst_41 = arith.constant 0.000000e+00 : f32
    %66 = vector.broadcast %cst_41 : f32 to vector<16x128xf32>
    %67 = arith.maximumf %65, %66 : vector<16x128xf32>
    %68 = vector.extract_strided_slice %41 {offsets = [2, 0], sizes = [1, 128], strides = [1, 1]} : vector<8x128xf32> to vector<1x128xf32>
    %69 = vector.broadcast %68 : vector<1x128xf32> to vector<16x128xf32>
    %70 = arith.mulf %67, %69 : vector<16x128xf32>
    %71 = vector.extract_strided_slice %41 {offsets = [3, 0], sizes = [1, 128], strides = [1, 1]} : vector<8x128xf32> to vector<1x128xf32>
    %72 = vector.broadcast %71 : vector<1x128xf32> to vector<16x128xf32>
    %73 = arith.addf %70, %72 : vector<16x128xf32>
    %cst_42 = arith.constant 0.000000e+00 : f32
    %74 = vector.broadcast %cst_42 : f32 to vector<16x128xf32>
    %75 = arith.maximumf %73, %74 : vector<16x128xf32>
    %76 = vector.shape_cast %75 : vector<16x128xf32> to vector<2x8x128xf32>
    %cst_43 = arith.constant dense<0.000000e+00> : vector<2x128xf32>
    %77 = vector.multi_reduction <add>, %76, %cst_43 [1] : vector<2x8x128xf32> to vector<2x128xf32>
    %c0_i32 = arith.constant 0 : i32
    %78 = arith.cmpi eq, %arg0, %c0_i32 : i32
    %79 = arith.extui %78 : i1 to i32
    %c0_i32_44 = arith.constant 0 : i32
    %80 = arith.cmpi ne, %79, %c0_i32_44 : i32
    scf.if %80 {
      %c0_46 = arith.constant 0 : index
      %c0_47 = arith.constant 0 : index
      %84 = vector.load %arg12[%c0_46, %c0_47] : memref<2x128xf32, #tpu.memory_space<vmem>>, vector<2x128xf32>
      tpu.vector_store %arg12[%c0_46, %c0_47], %77 {strides = array<i32>} : memref<2x128xf32, #tpu.memory_space<vmem>>, vector<2x128xf32>,
    } else {
    }
    %c1_i32 = arith.constant 1 : i32
    %81 = arith.cmpi eq, %arg0, %c1_i32 : i32
    %82 = arith.extui %81 : i1 to i32
    %c0_i32_45 = arith.constant 0 : i32
    %83 = arith.cmpi ne, %82, %c0_i32_45 : i32
    scf.if %83 {
      %c0_46 = arith.constant 0 : index
      %c0_47 = arith.constant 0 : index
      %84 = vector.load %arg12[%c0_46, %c0_47] : memref<2x128xf32, #tpu.memory_space<vmem>>, vector<2x128xf32>
      %c0_48 = arith.constant 0 : index
      %c0_49 = arith.constant 0 : index
      %85 = vector.load %arg10[%c0_48, %c0_49] : memref<8x128xf32, #tpu.memory_space<vmem>>, vector<8x128xf32>
      %86 = arith.truncf %84 : vector<2x128xf32> to vector<2x128xbf16>
      %c0_50 = arith.constant 0 : index
      %c0_51 = arith.constant 0 : index
      %c0_52 = arith.constant 0 : index
      %87 = vector.load %arg7[%c0_50, %c0_51, %c0_52] : memref<2x128x128xbf16, #tpu.memory_space<vmem>>, vector<1x128x128xbf16>
      %88 = vector.shape_cast %87 : vector<1x128x128xbf16> to vector<128x128xbf16>
      %cst_53 = arith.constant dense<0.000000e+00> : vector<2x128xf32>
      %89 = tpu.matmul %86, %88, %cst_53 {dimension_numbers = #tpu.dot_dimension_numbers<[1], [0], [0], [1], [0, 0, 1, 1], [], []>} : vector<2x128xbf16>, vector<128x128xbf16>, vector<2x128xf32> -> vector<2x128xf32>
      %90 = arith.truncf %77 : vector<2x128xf32> to vector<2x128xbf16>
      %c1_54 = arith.constant 1 : index
      %c0_55 = arith.constant 0 : index
      %c0_56 = arith.constant 0 : index
      %91 = vector.load %arg7[%c1_54, %c0_55, %c0_56] : memref<2x128x128xbf16, #tpu.memory_space<vmem>>, vector<1x128x128xbf16>
      %92 = vector.shape_cast %91 : vector<1x128x128xbf16> to vector<128x128xbf16>
      %cst_57 = arith.constant dense<0.000000e+00> : vector<2x128xf32>
      %93 = tpu.matmul %90, %92, %cst_57 {dimension_numbers = #tpu.dot_dimension_numbers<[1], [0], [0], [1], [0, 0, 1, 1], [], []>} : vector<2x128xbf16>, vector<128x128xbf16>, vector<2x128xf32> -> vector<2x128xf32>
      %94 = arith.addf %89, %93 : vector<2x128xf32>
      %95 = vector.extract_strided_slice %85 {offsets = [0, 0], sizes = [1, 128], strides = [1, 1]} : vector<8x128xf32> to vector<1x128xf32>
      %96 = vector.broadcast %95 : vector<1x128xf32> to vector<2x128xf32>
      %97 = arith.addf %94, %96 : vector<2x128xf32>
      %cst_58 = arith.constant 0.000000e+00 : f32
      %98 = vector.broadcast %cst_58 : f32 to vector<2x128xf32>
      %99 = arith.maximumf %97, %98 : vector<2x128xf32>
      %100 = arith.truncf %99 : vector<2x128xf32> to vector<2x128xbf16>
      %c0_59 = arith.constant 0 : index
      %c0_60 = arith.constant 0 : index
      %101 = vector.load %arg8[%c0_59, %c0_60] : memref<128x128xbf16, #tpu.memory_space<vmem>>, vector<128x128xbf16>
      %cst_61 = arith.constant dense<0.000000e+00> : vector<2x128xf32>
      %102 = tpu.matmul %100, %101, %cst_61 {dimension_numbers = #tpu.dot_dimension_numbers<[1], [0], [0], [1], [0, 0, 1, 1], [], []>} : vector<2x128xbf16>, vector<128x128xbf16>, vector<2x128xf32> -> vector<2x128xf32>
      %103 = vector.extract_strided_slice %85 {offsets = [1, 0], sizes = [1, 128], strides = [1, 1]} : vector<8x128xf32> to vector<1x128xf32>
      %104 = vector.broadcast %103 : vector<1x128xf32> to vector<2x128xf32>
      %105 = arith.addf %102, %104 : vector<2x128xf32>
      %cst_62 = arith.constant 0.000000e+00 : f32
      %106 = vector.broadcast %cst_62 : f32 to vector<2x128xf32>
      %107 = arith.maximumf %105, %106 : vector<2x128xf32>
      %108 = arith.truncf %107 : vector<2x128xf32> to vector<2x128xbf16>
      %c0_63 = arith.constant 0 : index
      %c0_64 = arith.constant 0 : index
      %109 = vector.load %arg9[%c0_63, %c0_64] : memref<128x128xbf16, #tpu.memory_space<vmem>>, vector<128x128xbf16>
      %cst_65 = arith.constant dense<0.000000e+00> : vector<2x128xf32>
      %110 = tpu.matmul %108, %109, %cst_65 {dimension_numbers = #tpu.dot_dimension_numbers<[1], [0], [0], [1], [0, 0, 1, 1], [], []>} : vector<2x128xbf16>, vector<128x128xbf16>, vector<2x128xf32> -> vector<2x128xf32>
      %111 = vector.extract_strided_slice %85 {offsets = [2, 0], sizes = [1, 128], strides = [1, 1]} : vector<8x128xf32> to vector<1x128xf32>
      %112 = vector.broadcast %111 : vector<1x128xf32> to vector<2x128xf32>
      %113 = arith.addf %110, %112 : vector<2x128xf32>
      %114 = tpu.iota {dimensions = array<i32: 1>} : vector<2x128xi32>
      %c4_i32 = arith.constant 4 : i32
      %115 = vector.broadcast %c4_i32 : i32 to vector<2x128xi32>
      %116 = arith.cmpi slt, %114, %115 : vector<2x128xi32>
      %cst_66 = arith.constant -1.000000e+30 : f32
      %117 = vector.broadcast %cst_66 : f32 to vector<2x128xf32>
      %118 = arith.select %116, %113, %117 : vector<2x128xi1>, vector<2x128xf32>
      %cst_67 = arith.constant dense<0xFF800000> : vector<2xf32>
      %119 = vector.multi_reduction <maximumf>, %118, %cst_67 [1] : vector<2x128xf32> to vector<2xf32>
      %120 = vector.shape_cast %119 : vector<2xf32> to vector<2x1xf32>
      %121 = vector.broadcast %120 : vector<2x1xf32> to vector<2x128xf32>
      %122 = arith.subf %118, %121 : vector<2x128xf32>
      %123 = vector.broadcast %120 : vector<2x1xf32> to vector<2x128xf32>
      %124 = arith.subf %118, %123 : vector<2x128xf32>
      %125 = math.exp %124 : vector<2x128xf32>
      %cst_68 = arith.constant dense<0.000000e+00> : vector<2xf32>
      %126 = vector.multi_reduction <add>, %125, %cst_68 [1] : vector<2x128xf32> to vector<2xf32>
      %127 = vector.shape_cast %126 : vector<2xf32> to vector<2x1xf32>
      %128 = math.log %127 : vector<2x1xf32>
      %129 = vector.broadcast %128 : vector<2x1xf32> to vector<2x128xf32>
      %130 = arith.subf %122, %129 : vector<2x128xf32>
      %cst_69 = arith.constant dense<0xFF800000> : vector<2xf32>
      %131 = vector.multi_reduction <maximumf>, %130, %cst_69 [1] : vector<2x128xf32> to vector<2xf32>
      %132 = vector.shape_cast %131 : vector<2xf32> to vector<2x1xf32>
      %133 = vector.broadcast %132 : vector<2x1xf32> to vector<2x128xf32>
      %134 = arith.subf %130, %133 : vector<2x128xf32>
      %135 = vector.broadcast %132 : vector<2x1xf32> to vector<2x128xf32>
      %136 = arith.subf %130, %135 : vector<2x128xf32>
      %137 = math.exp %136 : vector<2x128xf32>
      %cst_70 = arith.constant dense<0.000000e+00> : vector<2xf32>
      %138 = vector.multi_reduction <add>, %137, %cst_70 [1] : vector<2x128xf32> to vector<2xf32>
      %139 = vector.shape_cast %138 : vector<2xf32> to vector<2x1xf32>
      %140 = math.log %139 : vector<2x1xf32>
      %141 = vector.broadcast %140 : vector<2x1xf32> to vector<2x128xf32>
      %142 = arith.subf %134, %141 : vector<2x128xf32>
      %143 = arith.mulf %84, %84 : vector<2x128xf32>
      %cst_71 = arith.constant dense<0.000000e+00> : vector<2xf32>
      %144 = vector.multi_reduction <add>, %143, %cst_71 [1] : vector<2x128xf32> to vector<2xf32>
      %145 = vector.shape_cast %144 : vector<2xf32> to vector<2x1xf32>
      %cst_72 = arith.constant 1.000000e-24 : f32
      %146 = vector.broadcast %cst_72 : f32 to vector<2x1xf32>
      %147 = arith.maximumf %145, %146 : vector<2x1xf32>
      %148 = math.rsqrt %147 : vector<2x1xf32>
      %149 = vector.broadcast %148 : vector<2x1xf32> to vector<2x128xf32>
      %150 = arith.mulf %84, %149 : vector<2x128xf32>
      %151 = arith.mulf %77, %77 : vector<2x128xf32>
      %cst_73 = arith.constant dense<0.000000e+00> : vector<2xf32>
      %152 = vector.multi_reduction <add>, %151, %cst_73 [1] : vector<2x128xf32> to vector<2xf32>
      %153 = vector.shape_cast %152 : vector<2xf32> to vector<2x1xf32>
      %cst_74 = arith.constant 1.000000e-24 : f32
      %154 = vector.broadcast %cst_74 : f32 to vector<2x1xf32>
      %155 = arith.maximumf %153, %154 : vector<2x1xf32>
      %156 = math.rsqrt %155 : vector<2x1xf32>
      %157 = vector.broadcast %156 : vector<2x1xf32> to vector<2x128xf32>
      %158 = arith.mulf %77, %157 : vector<2x128xf32>
      %cst_75 = arith.constant dense<0.000000e+00> : vector<2x2xf32>
      %159 = tpu.matmul %150, %158, %cst_75 {dimension_numbers = #tpu.dot_dimension_numbers<[1], [1], [0], [0], [0, 0, 1, 0], [], []>} : vector<2x128xf32>, vector<2x128xf32>, vector<2x2xf32> -> vector<2x2xf32>
      %cst_76 = arith.constant 2.000000e+00 : f32
      %160 = vector.broadcast %cst_76 : f32 to vector<2x2xf32>
      %161 = arith.mulf %159, %160 : vector<2x2xf32>
      %162 = tpu.transpose %161, [1, 0] : vector<2x2xf32> -> vector<2x2xf32>
      %cst_77 = arith.constant dense<0.000000e+00> : vector<2x2xf32>
      %163 = tpu.matmul %150, %150, %cst_77 {dimension_numbers = #tpu.dot_dimension_numbers<[1], [1], [0], [0], [0, 0, 1, 0], [], []>} : vector<2x128xf32>, vector<2x128xf32>, vector<2x2xf32> -> vector<2x2xf32>
      %cst_78 = arith.constant 2.000000e+00 : f32
      %164 = vector.broadcast %cst_78 : f32 to vector<2x2xf32>
      %165 = arith.mulf %163, %164 : vector<2x2xf32>
      %cst_79 = arith.constant dense<0.000000e+00> : vector<2x2xf32>
      %166 = tpu.matmul %158, %158, %cst_79 {dimension_numbers = #tpu.dot_dimension_numbers<[1], [1], [0], [0], [0, 0, 1, 0], [], []>} : vector<2x128xf32>, vector<2x128xf32>, vector<2x2xf32> -> vector<2x2xf32>
      %cst_80 = arith.constant 2.000000e+00 : f32
      %167 = vector.broadcast %cst_80 : f32 to vector<2x2xf32>
      %168 = arith.mulf %166, %167 : vector<2x2xf32>
      %169 = tpu.iota {dimensions = array<i32: 0>} : vector<2x2xi32>
      %170 = tpu.iota {dimensions = array<i32: 1>} : vector<2x2xi32>
      %171 = arith.cmpi eq, %169, %170 : vector<2x2xi32>
      %172 = arith.extui %171 : vector<2x2xi1> to vector<2x2xi32>
      %173 = arith.sitofp %172 : vector<2x2xi32> to vector<2x2xf32>
      %cst_81 = arith.constant 1.000000e+00 : f32
      %174 = vector.broadcast %cst_81 : f32 to vector<2x2xf32>
      %175 = arith.subf %174, %173 : vector<2x2xf32>
      %176 = arith.mulf %165, %175 : vector<2x2xf32>
      %cst_82 = arith.constant 8.000000e-01 : f32
      %177 = vector.broadcast %cst_82 : f32 to vector<2x2xf32>
      %178 = arith.mulf %176, %177 : vector<2x2xf32>
      %cst_83 = arith.constant 1.000000e+00 : f32
      %179 = vector.broadcast %cst_83 : f32 to vector<2x2xf32>
      %180 = arith.subf %179, %173 : vector<2x2xf32>
      %181 = arith.mulf %168, %180 : vector<2x2xf32>
      %cst_84 = arith.constant 8.000000e-01 : f32
      %182 = vector.broadcast %cst_84 : f32 to vector<2x2xf32>
      %183 = arith.mulf %181, %182 : vector<2x2xf32>
      %cst_85 = arith.constant dense<0xFF800000> : vector<2xf32>
      %184 = vector.multi_reduction <maximumf>, %161, %cst_85 [1] : vector<2x2xf32> to vector<2xf32>
      %185 = vector.shape_cast %184 : vector<2xf32> to vector<2x1xf32>
      %cst_86 = arith.constant dense<0xFF800000> : vector<2xf32>
      %186 = vector.multi_reduction <maximumf>, %178, %cst_86 [1] : vector<2x2xf32> to vector<2xf32>
      %187 = vector.shape_cast %186 : vector<2xf32> to vector<2x1xf32>
      %188 = arith.maximumf %185, %187 : vector<2x1xf32>
      %189 = vector.broadcast %188 : vector<2x1xf32> to vector<2x2xf32>
      %190 = arith.subf %161, %189 : vector<2x2xf32>
      %191 = math.exp %190 : vector<2x2xf32>
      %cst_87 = arith.constant dense<0.000000e+00> : vector<2xf32>
      %192 = vector.multi_reduction <add>, %191, %cst_87 [1] : vector<2x2xf32> to vector<2xf32>
      %193 = vector.shape_cast %192 : vector<2xf32> to vector<2x1xf32>
      %194 = vector.broadcast %188 : vector<2x1xf32> to vector<2x2xf32>
      %195 = arith.subf %178, %194 : vector<2x2xf32>
      %196 = math.exp %195 : vector<2x2xf32>
      %cst_88 = arith.constant dense<0.000000e+00> : vector<2xf32>
      %197 = vector.multi_reduction <add>, %196, %cst_88 [1] : vector<2x2xf32> to vector<2xf32>
      %198 = vector.shape_cast %197 : vector<2xf32> to vector<2x1xf32>
      %199 = arith.addf %193, %198 : vector<2x1xf32>
      %200 = arith.mulf %161, %173 : vector<2x2xf32>
      %cst_89 = arith.constant dense<0.000000e+00> : vector<2xf32>
      %201 = vector.multi_reduction <add>, %200, %cst_89 [1] : vector<2x2xf32> to vector<2xf32>
      %202 = vector.shape_cast %201 : vector<2xf32> to vector<2x1xf32>
      %203 = arith.subf %202, %188 : vector<2x1xf32>
      %204 = math.log %199 : vector<2x1xf32>
      %205 = arith.subf %203, %204 : vector<2x1xf32>
      %cst_90 = arith.constant 0.000000e+00 : f32
      %206 = vector.broadcast %cst_90 : f32 to vector<2x1xf32>
      %207 = arith.subf %206, %205 : vector<2x1xf32>
      %cst_91 = arith.constant dense<0xFF800000> : vector<2xf32>
      %208 = vector.multi_reduction <maximumf>, %162, %cst_91 [1] : vector<2x2xf32> to vector<2xf32>
      %209 = vector.shape_cast %208 : vector<2xf32> to vector<2x1xf32>
      %cst_92 = arith.constant dense<0xFF800000> : vector<2xf32>
      %210 = vector.multi_reduction <maximumf>, %183, %cst_92 [1] : vector<2x2xf32> to vector<2xf32>
      %211 = vector.shape_cast %210 : vector<2xf32> to vector<2x1xf32>
      %212 = arith.maximumf %209, %211 : vector<2x1xf32>
      %213 = vector.broadcast %212 : vector<2x1xf32> to vector<2x2xf32>
      %214 = arith.subf %162, %213 : vector<2x2xf32>
      %215 = math.exp %214 : vector<2x2xf32>
      %cst_93 = arith.constant dense<0.000000e+00> : vector<2xf32>
      %216 = vector.multi_reduction <add>, %215, %cst_93 [1] : vector<2x2xf32> to vector<2xf32>
      %217 = vector.shape_cast %216 : vector<2xf32> to vector<2x1xf32>
      %218 = vector.broadcast %212 : vector<2x1xf32> to vector<2x2xf32>
      %219 = arith.subf %183, %218 : vector<2x2xf32>
      %220 = math.exp %219 : vector<2x2xf32>
      %cst_94 = arith.constant dense<0.000000e+00> : vector<2xf32>
      %221 = vector.multi_reduction <add>, %220, %cst_94 [1] : vector<2x2xf32> to vector<2xf32>
      %222 = vector.shape_cast %221 : vector<2xf32> to vector<2x1xf32>
      %223 = arith.addf %217, %222 : vector<2x1xf32>
      %224 = arith.mulf %162, %173 : vector<2x2xf32>
      %cst_95 = arith.constant dense<0.000000e+00> : vector<2xf32>
      %225 = vector.multi_reduction <add>, %224, %cst_95 [1] : vector<2x2xf32> to vector<2xf32>
      %226 = vector.shape_cast %225 : vector<2xf32> to vector<2x1xf32>
      %227 = arith.subf %226, %212 : vector<2x1xf32>
      %228 = math.log %223 : vector<2x1xf32>
      %229 = arith.subf %227, %228 : vector<2x1xf32>
      %cst_96 = arith.constant 0.000000e+00 : f32
      %230 = vector.broadcast %cst_96 : f32 to vector<2x1xf32>
      %231 = arith.subf %230, %229 : vector<2x1xf32>
      %232 = vector.shape_cast %207 : vector<2x1xf32> to vector<1x2x1xf32>
      %cst_97 = arith.constant dense<0.000000e+00> : vector<1xf32>
      %233 = vector.multi_reduction <add>, %232, %cst_97 [1, 2] : vector<1x2x1xf32> to vector<1xf32>
      %234 = vector.shape_cast %233 : vector<1xf32> to vector<1x1x1xf32>
      %235 = vector.extract %234[0, 0, 0] : f32 from vector<1x1x1xf32>
      %cst_98 = arith.constant 2.000000e+00 : f32
      %236 = arith.divf %235, %cst_98 : f32
      %237 = vector.shape_cast %231 : vector<2x1xf32> to vector<1x2x1xf32>
      %cst_99 = arith.constant dense<0.000000e+00> : vector<1xf32>
      %238 = vector.multi_reduction <add>, %237, %cst_99 [1, 2] : vector<1x2x1xf32> to vector<1xf32>
      %239 = vector.shape_cast %238 : vector<1xf32> to vector<1x1x1xf32>
      %240 = vector.extract %239[0, 0, 0] : f32 from vector<1x1x1xf32>
      %cst_100 = arith.constant 2.000000e+00 : f32
      %241 = arith.divf %240, %cst_100 : f32
      %242 = arith.addf %236, %241 : f32
      %cst_101 = arith.constant 5.000000e-01 : f32
      %243 = arith.mulf %cst_101, %242 : f32
      %244 = vector.broadcast %243 : f32 to vector<2x128xf32>
      %245 = arith.addf %142, %244 : vector<2x128xf32>
      %c0_102 = arith.constant 0 : index
      %c0_103 = arith.constant 0 : index
      %246 = vector.load %arg11[%c0_102, %c0_103] : memref<2x128xf32, #tpu.memory_space<vmem>>, vector<2x128xf32>
      tpu.vector_store %arg11[%c0_102, %c0_103], %245 {strides = array<i32>} : memref<2x128xf32, #tpu.memory_space<vmem>>, vector<2x128xf32>,
    } else {
    }
    return
  }
  func.func @transform_0(%arg0: i32) -> (i32, i32) {
    %c0_i32 = arith.constant 0 : i32
    %c0_i32_0 = arith.constant 0 : i32
    %c0_i32_1 = arith.constant 0 : i32
    return %c0_i32, %c0_i32_0 : i32, i32
  }
  func.func @transform_1(%arg0: i32) -> (i32, i32, i32) {
    %c0_i32 = arith.constant 0 : i32
    %c0_i32_0 = arith.constant 0 : i32
    %c0_i32_1 = arith.constant 0 : i32
    return %arg0, %c0_i32, %c0_i32_0 : i32, i32, i32
  }
  func.func @transform_2(%arg0: i32) -> (i32, i32, i32) {
    %c0_i32 = arith.constant 0 : i32
    %c0_i32_0 = arith.constant 0 : i32
    %c0_i32_1 = arith.constant 0 : i32
    return %arg0, %c0_i32, %c0_i32_0 : i32, i32, i32
  }
  func.func @transform_3(%arg0: i32) -> (i32, i32, i32, i32) {
    %c0_i32 = arith.constant 0 : i32
    %c0_i32_0 = arith.constant 0 : i32
    %c0_i32_1 = arith.constant 0 : i32
    %c0_i32_2 = arith.constant 0 : i32
    return %arg0, %c0_i32, %c0_i32_0, %c0_i32_1 : i32, i32, i32, i32
  }
  func.func @transform_4(%arg0: i32) -> (i32, i32, i32, i32) {
    %c0_i32 = arith.constant 0 : i32
    %c0_i32_0 = arith.constant 0 : i32
    %c0_i32_1 = arith.constant 0 : i32
    %c0_i32_2 = arith.constant 0 : i32
    return %arg0, %c0_i32, %c0_i32_0, %c0_i32_1 : i32, i32, i32, i32
  }
  func.func @transform_5(%arg0: i32) -> (i32, i32, i32, i32) {
    %c0_i32 = arith.constant 0 : i32
    %c0_i32_0 = arith.constant 0 : i32
    %c0_i32_1 = arith.constant 0 : i32
    %c0_i32_2 = arith.constant 0 : i32
    return %arg0, %c0_i32, %c0_i32_0, %c0_i32_1 : i32, i32, i32, i32
  }
  func.func @transform_6(%arg0: i32) -> (i32, i32, i32) {
    %c0_i32 = arith.constant 0 : i32
    %c0_i32_0 = arith.constant 0 : i32
    %c0_i32_1 = arith.constant 0 : i32
    %c0_i32_2 = arith.constant 0 : i32
    return %c0_i32, %c0_i32_0, %c0_i32_1 : i32, i32, i32
  }
  func.func @transform_7(%arg0: i32) -> (i32, i32) {
    %c0_i32 = arith.constant 0 : i32
    %c0_i32_0 = arith.constant 0 : i32
    %c0_i32_1 = arith.constant 0 : i32
    return %c0_i32, %c0_i32_0 : i32, i32
  }
  func.func @transform_8(%arg0: i32) -> (i32, i32) {
    %c0_i32 = arith.constant 0 : i32
    %c0_i32_0 = arith.constant 0 : i32
    %c0_i32_1 = arith.constant 0 : i32
    return %c0_i32, %c0_i32_0 : i32, i32
  }
  func.func @transform_9(%arg0: i32) -> (i32, i32) {
    %c0_i32 = arith.constant 0 : i32
    %c0_i32_0 = arith.constant 0 : i32
    %c0_i32_1 = arith.constant 0 : i32
    return %c0_i32, %c0_i32_0 : i32, i32
  }
  func.func @transform_10(%arg0: i32) -> (i32, i32) {
    %c0_i32 = arith.constant 0 : i32
    %c0_i32_0 = arith.constant 0 : i32
    %c0_i32_1 = arith.constant 0 : i32
    return %c0_i32, %c0_i32_0 : i32, i32
  }
}

</mosaic_0001>

<bundles_post_ra>
// kernel: gin_forward.1
= control target key start
LH: loop header
LB: loop body
LE: loop exit
PB: predicated region body
PF: predicated region fallthrough
CT: control target
= control target key end

     0   :  { %s3165_s0 = inlined_call_operand.hbm [shape: f32[2,2], index: 0, kind: input, shape index: {}]   ;;  %s3166_s1 = inlined_call_operand.hbm [shape: f32[2,16,128], index: 1, kind: input, shape index: {}]   ;;  %s3167_s2 = inlined_call_operand.hbm [shape: bf16[2,16,16], index: 2, kind: input, shape index: {}]   ;;  %s3168_s3 = inlined_call_operand.hbm [shape: bf16[2,2,128,128], index: 3, kind: input, shape index: {}]   ;;  %s3169_s4 = inlined_call_operand.hbm [shape: bf16[2,2,128,128], index: 4, kind: input, shape index: {}]   ;;  %s3170_s5 = inlined_call_operand.hbm [shape: f32[2,2,8,128], index: 5, kind: input, shape index: {}]   ;;  %s3171_s6 = inlined_call_operand.hbm [shape: bf16[2,128,128], index: 6, kind: input, shape index: {}]   ;;  %s3172_s7 = inlined_call_operand.hbm [shape: bf16[128,128], index: 7, kind: input, shape index: {}]   ;;  %s3173_s8 = inlined_call_operand.hbm [shape: bf16[128,128], index: 8, kind: input, shape index: {}]   ;;  %s3174_s9 = inlined_call_operand.vmem [shape: f32[8,128], index: 9, kind: input, shape index: {}]   ;;  %s3175_s10 = inlined_call_operand.hbm [shape: f32[2,128], index: 10, kind: output, shape index: {}]  }
   0x1   :  { %3191 = sst [smem:[#allocation35_spill]] %s3167_s2 }
   0x2   :  { %3192 = sst [smem:[#allocation36_spill]] %s3171_s6 }
   0x3   :  { %3193 = sst [smem:[#allocation37_spill]] %s3174_s9 }
   0x4   :  { %3194 = sst [smem:[#allocation38_spill]] %s3175_s10 }
   0x5   :  { %15 = vsyncpa [#allocation6], 0 }
   0x6   :  { %16 = vsyncpa [#allocation4], 0 }
   0x7   :  { %18 = vsyncpa [#allocation4 + $0x1], 0 }
   0x8   :  { %19 = vsyncpa [#allocation9], 0 }
   0x9   :  { %21 = vsyncpa [#allocation9 + $0x1], 0 }
   0xa   :  { %22 = vsyncpa [#allocation12], 0 }
   0xb   :  { %24 = vsyncpa [#allocation12 + $0x1], 0 }
   0xc   :  { %25 = vsyncpa [#allocation15], 0 }
   0xd   :  { %26 = vsyncpa [#allocation18], 0 }
   0xe   :  { %27 = vsyncpa [#allocation5], 0  ;;  %s2788_s13 = smov 0   ;;  %s2790_s14 = smov 0  }
   0xf   :  { %s2792_s15 = smov 0   ;;  %s2794_s16 = smov 0  }
  0x10 LB: > { %3195 = sst [smem:[#allocation27_spill]] %s2712_s14  ;;  %s2807_s17 = sadd.s32 4294967295, %s2720_s16   ;;  %s2720_s16 = sphi %s2794_s16, %s3222_s16   ;;  %s2716_s15 = sphi %s2792_s15, %s3225_s15   ;;  %s2712_s14 = sphi %s2790_s14, %s3224_s14   ;;  %s2708_s13 = sphi %s2788_s13, %s3223_s13  }
  0x11   : > { %3196 = sst [smem:[#allocation28_spill]] %s2716_s15  ;;  %p74_p0 = scmp.ne.s32.totalorder %s2712_s14, %s2708_s13 }
  0x12   : > { %3197 = sst [smem:[#allocation29_spill]] %s2807_s17  ;;  %p75_p1 = scmp.eq.s32.totalorder %s2807_s17, 0 }
  0x13   : > { %p1830_p2 = scmp.ge.s32.totalorder %s2720_s16, 1  ;;  %p294_p3 = scmp.lt.s32.totalorder %s2720_s16, 3 }
  0x14   : > { %p1831_p4 = scmp.ne.s32.totalorder %s2807_s17, 0  ;;  %p2816_p5 = por %p75_p1, %p74_p0 }
  0x15   : > { %s3200_s6 = sld [smem:[#allocation36_spill]]  ;;  %p2823_p6 = pnand %p1830_p2, %p294_p3 }
  0x16   : > { %s3198_s18 = scalar_select %p2816_p5, 1, 0 }
  0x17   : > { %s3201_s22 = scalar_select %p2823_p6, 1, 0 }
  0x18   : > { %3199 = sst [smem:[#allocation30_spill]] %s3198_s18  ;;  %p2270_p7 = pneg %p2823_p6 }
  0x19   : > { %3202 = sst [smem:[#allocation31_spill]] %s3201_s22  ;;  %s2722_s23 = smov [#allocation14]  }
  0x1a   : > { %s317_s24 = sshll.u32 %s2722_s23, 4  ;;  %p2831_p8 = pnand %p2270_p7, %p75_p1  ;;  %s318_s24 = int_to_ptr.vmem [resolvable:$true] %s317_s24 }
  0x1b   : > { %s315_s21 = sshll.u32 %s3200_s6, 4  ;;  %s2836_s26 = sadd.s32 1, %s2720_s16   ;;  %s316_s21 = int_to_ptr.hbm [resolvable:$true] %s315_s21 }
  0x1c   : > { %3204 = sst [smem:[#allocation32_spill]] %s2836_s26  ;;  %s3176_s27 = smov 64  }
  0x1d   : > { %s3178_s28 = smov 4   ;;  %s58_s29 = ssub.s32 %s2720_s16, %s2836_s26 }
  0x1e   : > { %2276 = dma.hbm_to_vmem [thread:$0]  (!%p2831_p8), %s316_s21, 2048, %s318_s24, [#allocation15], %s3176_s27, %s3176_s27, %s3178_s28  }
  0x1f   : > { %s61_s30 = sadd.s32 1, %s2716_s15  ;;  %p59_p9 = scmp.eq.s32.totalorder %s58_s29, 0 }
  0x20   : > { %p68_p10 = scmp.ne.s32.totalorder %s2716_s15, %s2712_s14  ;;  %p69_p11 = scmp.eq.s32.totalorder %s2720_s16, 0 }
  0x21   : > { %p2303_p12 = scmp.lt.s32.totalorder %s2720_s16, 2  ;;  %s2854_s12 = sand.u32 1, %s2716_s15  }
  0x22   : > { %s2851_s11 = scalar_select %p59_p9, %s2716_s15, %s61_s30  }
  0x23   : > { %p70_p13 = por %p69_p11, %p68_p10  ;;  %s3183_s13 = sand.u32 1, %s2720_s16  }
  0x24   : > { %3205 = sst [smem:[#allocation33_spill]] %s2851_s11  ;;  %s1839_s19 = sshll.u32 %s2854_s12, 3 }
  0x25   : > { %p2858_p0 = pnand %p2303_p12, %p70_p13  ;;  %s2165_s21 = sshll.u32 %s2720_s16, 3 }
  0x26   : > { %s3207_s2 = sld [smem:[#allocation35_spill]]  ;;  %s388_s28 = scalar_lea.vmem [#allocation8], %s1839_s19 }
  0x27   : > { %s396_s30 = sshll.u32 %s388_s28, 4  ;;  %s2868_s6 = scalar_lea.sflag [#allocation9], %s3183_s13  ;;  %s397_s30 = int_to_ptr.vmem [resolvable:$true] %s396_s30 }
  0x28   : > { %3208 = sst [smem:[#allocation34_spill]] %s2868_s6  ;;  %p2872_p3 = pneg %p2858_p0 }
  0x2c   : > { %s393_s29 = scalar_lea.hbm %s3207_s2, %s2165_s21  ;;  %s2416_s21 = scalar_lea.hbm %s3207_s2, 16 }
  0x2d   : > { %s394_s27 = sshll.u32 %s393_s29, 4  ;;  %s395_s27 = int_to_ptr.hbm [resolvable:$true] %s394_s27 }
  0x2e   : > { %s2409_s11 = sshra.s32 %s395_s27, 4  ;;  %s2410_s11 = int_to_ptr.hbm [resolvable:$true] %s2409_s11 }
  0x2f   : > { %s2411_s15 = scalar_lea.hbm %s2410_s11, 8  ;;  %p2417_p10 = scmp.lt.s32.totalorder %s2410_s11, %s3207_s2 }
  0x30   : > { %p2412_p2 = scmp.ne.s32.totalorder %s2410_s11, %s2411_s15  ;;  %p2418_p11 = scmp.lt.s32.totalorder %s2416_s21, %s2411_s15 }
  0x32   : > { %p2414_p7 = pnand %p2872_p3, %p2412_p2  ;;  %p2419_p12 = por %p2418_p11, %p2417_p10 }
  0x34   : > { %p2415_p9 = pneg %p2414_p7 }
  0x36   : > { %p2420_p13 = pnand %p2419_p12, %p2415_p9 }
  0x38   : > { %2423 = shalt.err (!%p2420_p13)
}
  0x39   : > { %s3210_s29 = smov 4   ;;  %s3211_s13 = smov 64  }
  0x3a   : > { %2289 = dma.hbm_to_vmem [thread:$0]  (!%p2858_p0), %s395_s27, 128, %s397_s30, %s2868_s6, %s3211_s13, %s3211_s13, %s3210_s29  }
  0x3b   : > { %s1842_s19 = sshll.u32 %s2854_s12, 7  ;;  %s2166_s28 = sshll.u32 %s2720_s16, 7 }
  0x3c   : > { %s415_s11 = scalar_lea.hbm %s3168_s3, %s2166_s28  ;;  %s410_s21 = scalar_lea.vmem [#allocation10], %s1842_s19 }
  0x3d   : > { %s416_s15 = sshll.u32 %s415_s11, 4  ;;  %s418_s23 = sshll.u32 %s410_s21, 4  ;;  %s2895_s15 = int_to_ptr.hbm [resolvable:$true] %s416_s15  ;;  %s2897_s23 = int_to_ptr.vmem [resolvable:$true] %s418_s23 }
  0x3e   : > { %s437_s18 = scalar_lea.hbm %s3169_s4, %s2166_s28  ;;  %s432_s27 = scalar_lea.vmem [#allocation11], %s1842_s19 }
  0x3f   : > { %s440_s30 = sshll.u32 %s432_s27, 4  ;;  %s438_s14 = sshll.u32 %s437_s18, 4  ;;  %s441_s30 = int_to_ptr.vmem [resolvable:$true] %s440_s30  ;;  %s439_s14 = int_to_ptr.hbm [resolvable:$true] %s438_s14 }
  0x40   : > { %s306_s10 = sshll.u32 %s3165_s0, 4  ;;  %s3212_s11 = sand.u32 1, %s2720_s16   ;;  %s307_s10 = int_to_ptr.hbm [resolvable:$true] %s306_s10 }
  0x41   : > { %s2907_s22 = scalar_lea.sflag [#allocation12], %s3212_s11  ;;  %s2439_s21 = sshra.s32 %s439_s14, 4  ;;  %s2440_s21 = int_to_ptr.hbm [resolvable:$true] %s2439_s21 }
  0x42   : > { %s2441_s6 = scalar_lea.hbm %s2440_s21, 128  ;;  %s2446_s18 = scalar_lea.hbm %s3169_s4, 256 }
  0x43   : > { %p2442_p2 = scmp.ne.s32.totalorder %s2440_s21, %s2441_s6  ;;  %p2447_p10 = scmp.lt.s32.totalorder %s2440_s21, %s3169_s4 }
  0x44   : > { %p2448_p11 = scmp.lt.s32.totalorder %s2446_s18, %s2441_s6 }
  0x45   : > { %p2444_p7 = pnand %p2442_p2, %p2872_p3 }
  0x46   : > { %p2449_p12 = por %p2448_p11, %p2447_p10 }
  0x47   : > { %p2445_p9 = pneg %p2444_p7 }
  0x49   : > { %p2450_p13 = pnand %p2449_p12, %p2445_p9 }
  0x4b   : > { %2453 = shalt.err (!%p2450_p13)
}
  0x4c   : > { %2295 = dma.hbm_to_vmem [thread:$0]  (!%p2858_p0), %s439_s14, 2048, %s441_s30, %s2907_s22, %s3211_s13, %s3211_s13, %s3210_s29  }
  0x4d   : > { %s2725_s17 = smov [#allocation3]   ;;  %s329_s9 = sshll.u32 %s3172_s7, 4  ;;  %s330_s9 = int_to_ptr.hbm [resolvable:$true] %s329_s9 }
  0x4e   : > { %2273 = dma.hbm_to_smem (!%p2831_p8), %s307_s10, 32, %s2725_s17, [#allocation6]  }
  0x4f   : > { %s2726_s11 = smov [#allocation16]   ;;  %s343_s14 = sshll.u32 %s3173_s8, 4  ;;  %s344_s14 = int_to_ptr.hbm [resolvable:$true] %s343_s14 }
  0x50   : > { %s331_s21 = sshll.u32 %s2726_s11, 4  ;;  %s2727_s30 = smov [#allocation17]   ;;  %s332_s21 = int_to_ptr.vmem [resolvable:$true] %s331_s21 }
  0x51   : > { %2279 = dma.hbm_to_vmem [thread:$0]  (!%p2831_p8), %s330_s9, 1024, %s332_s21, [#allocation15], %s3211_s13, %s3211_s13, %s3210_s29  }
  0x52   : > { %s345_s10 = sshll.u32 %s2727_s30, 4  ;;  %s1836_s18 = sshll.u32 %s2854_s12, 4  ;;  %s346_s10 = int_to_ptr.vmem [resolvable:$true] %s345_s10 }
  0x53   : > { %2282 = dma.hbm_to_vmem [thread:$0]  (!%p2831_p8), %s344_s14, 1024, %s346_s10, [#allocation18], %s3211_s13, %s3211_s13, %s3210_s29  }
  0x54   : > { %s2164_s28 = sshll.u32 %s2720_s16, 4  ;;  %s366_s27 = scalar_lea.vmem [#allocation7], %s1836_s18 }
  0x55   : > { %s371_s6 = scalar_lea.hbm %s3166_s1, %s2164_s28  ;;  %s374_s11 = sshll.u32 %s366_s27, 4  ;;  %s375_s11 = int_to_ptr.vmem [resolvable:$true] %s374_s11 }
  0x56   : > { %s372_s9 = sshll.u32 %s371_s6, 4  ;;  %s363_s21 = scalar_lea.sflag [#allocation4], %s2854_s12  ;;  %s373_s9 = int_to_ptr.hbm [resolvable:$true] %s372_s9 }
  0x57   : > { %s2544_s2 = sshra.s32 %s373_s9, 4  ;;  %s2551_s14 = scalar_lea.hbm %s3166_s1, 32  ;;  %s2545_s2 = int_to_ptr.hbm [resolvable:$true] %s2544_s2 }
  0x58   : > { %s2546_s19 = scalar_lea.hbm %s2545_s2, 16  ;;  %p2552_p8 = scmp.lt.s32.totalorder %s2545_s2, %s3166_s1 }
  0x59   : > { %p2547_p2 = scmp.ne.s32.totalorder %s2545_s2, %s2546_s19  ;;  %p2553_p10 = scmp.lt.s32.totalorder %s2551_s14, %s2546_s19 }
  0x5b   : > { %p2549_p7 = pnand %p2547_p2, %p2872_p3  ;;  %p2554_p11 = por %p2553_p10, %p2552_p8 }
  0x5d   : > { %p2550_p9 = pneg %p2549_p7 }
  0x5f   : > { %p2555_p12 = pnand %p2554_p11, %p2550_p9 }
  0x61   : > { %2558 = shalt.err (!%p2555_p12)
}
  0x62   : > { %s2728_s24 = smov 128   ;;  %s2729_s17 = smov 8  }
  0x63   : > { %2286 = dma.hbm_to_vmem [thread:$0]  (!%p2858_p0), %s373_s9, 256, %s375_s11, %s363_s21, %s2728_s24, %s2728_s24, %s2729_s17  }
  0x64   : > { %s459_s25 = scalar_lea.hbm %s3170_s5, %s2164_s28  ;;  %s454_s2 = scalar_lea.vmem [#allocation13], %s1836_s18 }
  0x65   : > { %s462_s19 = sshll.u32 %s454_s2, 4  ;;  %s460_s16 = sshll.u32 %s459_s25, 4  ;;  %s2967_s19 = int_to_ptr.vmem [resolvable:$true] %s462_s19  ;;  %s2969_s16 = int_to_ptr.hbm [resolvable:$true] %s460_s16 }
  0x66   : > { %s2574_s14 = sshra.s32 %s2895_s15, 4  ;;  %s2581_s21 = scalar_lea.hbm %s3168_s3, 256  ;;  %s2575_s14 = int_to_ptr.hbm [resolvable:$true] %s2574_s14 }
  0x67   : > { %s2576_s30 = scalar_lea.hbm %s2575_s14, 128  ;;  %p2582_p9 = scmp.lt.s32.totalorder %s2575_s14, %s3168_s3 }
  0x68   : > { %p2577_p13 = scmp.ne.s32.totalorder %s2575_s14, %s2576_s30  ;;  %p2583_p8 = scmp.lt.s32.totalorder %s2581_s21, %s2576_s30 }
  0x6a   : > { %p2579_p2 = pnand %p2577_p13, %p2872_p3  ;;  %p2584_p10 = por %p2583_p8, %p2582_p9 }
  0x6c   : > { %p2580_p7 = pneg %p2579_p2 }
  0x6e   : > { %p2585_p11 = pnand %p2584_p10, %p2580_p7 }
  0x70   : > { %2588 = shalt.err (!%p2585_p11)
}
  0x71   : > { %s3213_s18 = sld [smem:[#allocation34_spill]]  ;;  %s2604_s10 = sshra.s32 %s2969_s16, 4  ;;  %s2605_s10 = int_to_ptr.hbm [resolvable:$true] %s2604_s10 }
  0x72   : > { %s2606_s6 = scalar_lea.hbm %s2605_s10, 16  ;;  %s2611_s2 = scalar_lea.hbm %s3170_s5, 32 }
  0x73   : > { %p2607_p12 = scmp.ne.s32.totalorder %s2605_s10, %s2606_s6  ;;  %p2612_p7 = scmp.lt.s32.totalorder %s2605_s10, %s3170_s5 }
  0x74   : > { %p2613_p9 = scmp.lt.s32.totalorder %s2611_s2, %s2606_s6 }
  0x75   : > { %p2609_p13 = pnand %p2607_p12, %p2872_p3 }
  0x76   : > { %p2614_p8 = por %p2613_p9, %p2612_p7 }
  0x77   : > { %2292 = dma.hbm_to_vmem [thread:$0]  (!%p2858_p0), %s2895_s15, 2048, %s2897_s23, %s3213_s18, %s3211_s13, %s3211_s13, %s3210_s29  }
  0x78   : > { %p2610_p2 = pneg %p2609_p13 }
  0x7a   : > { %p2615_p10 = pnand %p2614_p8, %p2610_p2 }
  0x7c   : > { %2618 = shalt.err (!%p2615_p10)
}
  0x7d   : > { %2298 = dma.hbm_to_vmem [thread:$0]  (!%p2858_p0), %s2969_s16, 256, %s2967_s19, %s2907_s22, %s2728_s24, %s2728_s24, %s2729_s17  }
  0x7e   : > { %474 = sbr.rel (%p2823_p6) target bundleno = 2041 (0x7f9), region = 60  ;;  %s3215_s13 = sld [smem:[#allocation29_spill]] (!%p2823_p6) }
  0x83   : > { %2679 = dma.done.wait (%p75_p1), [#allocation6], 32  }
  0x84   : > { %2681 = vsyncadd (%p75_p1), [#allocation6], 4294967264  ;;  %s3216_s29 = sld [smem:[#allocation27_spill]] }
  0x8a   : > { %s481_s23 = sand.u32 1, %s3216_s29  }
  0x8b   : > { %s1853_s20 = sshll.u32 %s481_s23, 4  ;;  %s482_s11 = scalar_lea.sflag [#allocation4], %s481_s23 }
  0x8c   : > { %s485_s9 = scalar_lea.vmem [#allocation7], %s1853_s20 }
  0x8d   : > { %2683 = dma.done.wait (%p2816_p5), %s482_s11, 256  }
  0x8e   : > { %2685 = vsyncadd (%p2816_p5), %s482_s11, 4294967040  ;;  %s491_s22 = sand.u32 1, %s3215_s13   ;;  %s1854_s24 = sshll.u32 %s481_s23, 3 }
  0x8f   : > { %s492_s17 = scalar_lea.sflag [#allocation9], %s491_s22  ;;  %s495_s19 = scalar_lea.vmem [#allocation8], %s1854_s24 }
  0x90   : > { %2687 = dma.done.wait (%p2816_p5), %s492_s17, 2176  }
  0x91   : > { %2689 = vsyncadd (%p2816_p5), %s492_s17, 4294965120  ;;  %s1855_s16 = sshll.u32 %s481_s23, 7  ;;  %s512_s28 = scalar_lea.sflag [#allocation12], %s491_s22 }
  0x92   : > { %s3021_s21 = scalar_lea.vmem [#allocation10], %s1855_s16  ;;  %s3023_s12 = scalar_lea.vmem [#allocation11], %s1855_s16 }
  0x93   : > { %2691 = dma.done.wait (%p2816_p5), %s512_s28, 2304  }
  0x94   : > { %2693 = vsyncadd (%p2816_p5), %s512_s28, 4294964992  ;;  %s3029_s18 = scalar_lea.vmem [#allocation13], %s1853_s20 }
  0x95   : > { %2695 = dma.done.wait (%p75_p1), [#allocation15], 3072  }
  0x96   : > { %2697 = vsyncadd (%p75_p1), [#allocation15], 4294964224 }
  0x97   : > { %2699 = dma.done.wait (%p75_p1), [#allocation18], 1024  }
  0x98   : > { %2701 = vsyncadd (%p75_p1), [#allocation18], 4294966272 }
  0x99   : > { %546 = sfence }
  0x9a   : > { %v597_v0 = vld [vmem:[%s485_s9] sm:$0xff]  ;;  %v598_v1 = vld [vmem:[%s485_s9 + $0x8] sm:$0xff]  ;;  %vm609_vm0 = vcmask 130048   ;;  %s1861_s10 = sshll.u32 %s3215_s13, 7  ;;  %v599_v28 = vld [vmem:[%s3029_s18] sm:$0xff] }
  0x9b   : > { %v603_v2 = vpack.c.bf16 %v598_v1, %v597_v0  ;;  %v2177_v3 = vld [vmem:[%s3021_s21 + $0x38] sm:$0xff]  ;;  %v2176_v5 = vld [vmem:[%s3021_s21 + $0x30] sm:$0xff]  ;;  %v2175_v6 = vld [vmem:[%s3021_s21 + $0x28] sm:$0xff]  ;;  %s601_s6 = sld [smem:[#allocation3 + %s1861_s10]]  ;;  %v649_v30 = vperm.slane %v599_v28, 0  ;;  %v731_v39 = vperm.slane %v599_v28, 1 }
  0x9c   : > { %v3040_v4 = vld [vmem:[%s495_s19] sm:$0xff]  ;;  %698 = vmatpush.bf16.msra.mxu1 %v2177_v3  ;;  %v2174_v7 = vld [vmem:[%s3021_s21 + $0x20] sm:$0xff]  ;;  %v2171_v10 = vld [vmem:[%s3021_s21 + $0x8] sm:$0xff]  ;;  %v796_v45 = vperm.slane %v599_v28, 2  ;;  %v799_v50 = vperm.slane %v599_v28, 3  ;;  %s806_s25 = sadd.s32 1, %s1861_s10 }
  0x9d   : > { %620 = vmatpush.bf16.msra.mxu0 %v603_v2  ;;  %v2173_v8 = vld [vmem:[%s3021_s21 + $0x18] sm:$0xff]  ;;  %v2172_v9 = vld [vmem:[%s3021_s21 + $0x10] sm:$0xff]  ;;  %v2170_v11 = vld [vmem:[%s3021_s21] sm:$0xff]  ;;  %s807_s2 = sld [smem:[#allocation3 + %s806_s25]] }
  0x9e   : > { %v2185_v12 = vld [vmem:[%s3023_s12 + $0x38] sm:$0xff]  ;;  %v2184_v13 = vld [vmem:[%s3023_s12 + $0x30] sm:$0xff]  ;;  %v2183_v14 = vld [vmem:[%s3023_s12 + $0x28] sm:$0xff] }
  0x9f   : > { %780 = vmatpush.bf16.msra.mxu2 %v2185_v12  ;;  %v2182_v15 = vld [vmem:[%s3023_s12 + $0x20] sm:$0xff]  ;;  %v2181_v24 = vld [vmem:[%s3023_s12 + $0x18] sm:$0xff]  ;;  %v2180_v25 = vld [vmem:[%s3023_s12 + $0x10] sm:$0xff] }
  0xa0   : > { %1866 = vmatmul.msk.bf16.vlgmr.msra.gmra.mxu0 %vm609_vm0, %v3040_v4  ;;  %699 = vmatpush.bf16.msra.mxu1 %v2176_v5  ;;  %v2179_v26 = vld [vmem:[%s3023_s12 + $0x8] sm:$0xff]  ;;  %v2178_v27 = vld [vmem:[%s3023_s12] sm:$0xff]  ;;  %v2193_v37 = vld [vmem:[%s3021_s21 + $0x78] sm:$0xff] }
  0xa1   : > { %s602_s27 = sadd.f32 1.0, %s601_s6  ;;  %896 = vmatpush.bf16.msrb.mxu0 %v2193_v37  ;;  %v2192_v38 = vld [vmem:[%s3021_s21 + $0x70] sm:$0xff]  ;;  %v2191_v40 = vld [vmem:[%s3021_s21 + $0x68] sm:$0xff]  ;;  %v2190_v43 = vld [vmem:[%s3021_s21 + $0x60] sm:$0xff] }
  0xa2   : > { %v2189_v46 = vld [vmem:[%s3021_s21 + $0x58] sm:$0xff]  ;;  %v2188_v58 = vld [vmem:[%s3021_s21 + $0x50] sm:$0xff]  ;;  %v2187_v59 = vld [vmem:[%s3021_s21 + $0x48] sm:$0xff] }
  0xa3   : > { %781 = vmatpush.bf16.msra.mxu2 %v2184_v13  ;;  %v627_v17 = vstv %s602_s27  ;;  %v2186_v60 = vld [vmem:[%s3021_s21 + $0x40] sm:$0xff]  ;;  %v2201_v61 = vld [vmem:[%s3023_s12 + $0x78] sm:$0xff]  ;;  %v2200_v62 = vld [vmem:[%s3023_s12 + $0x70] sm:$0xff]  ;;  %s808_s14 = sadd.f32 1.0, %s807_s2 }
  0xa4   : > { %700 = vmatpush.bf16.msra.mxu1 %v2175_v6  ;;  %v628_v18 = vmul.f32 %v627_v17, %v597_v0  ;;  %v629_v19 = vmul.f32 %v627_v17, %v598_v1  ;;  %v2199_v63 = vld [vmem:[%s3023_s12 + $0x68] sm:$0xff]  ;;  %v2198_v0 = vld [vmem:[%s3023_s12 + $0x60] sm:$0xff] }
  0xa5   : > { %897 = vmatpush.bf16.msrb.mxu0 %v2192_v38  ;;  %v824_v2 = vstv %s808_s14  ;;  %v2194_v12 = vld [vmem:[%s3023_s12 + $0x40] sm:$0xff]  ;;  %v1931_v13 = vld [vmem:[%s3029_s18 + $0x8] sm:$0xff] }
  0xa7   : > { %782 = vmatpush.bf16.msra.mxu2 %v2183_v14 }
  0xa8   : > { %701 = vmatpush.bf16.msra.mxu1 %v2174_v7 }
  0xa9   : > { %898 = vmatpush.bf16.msrb.mxu0 %v2191_v40 }
  0xab   : > { %783 = vmatpush.bf16.msra.mxu2 %v2182_v15  ;;  %v847_v15 = vperm.slane %v1931_v13, 0 }
  0xac   : > { %702 = vmatpush.bf16.msra.mxu1 %v2173_v8 }
  0xad   : > { %899 = vmatpush.bf16.msrb.mxu0 %v2190_v43 }
  0xaf   : > { %784 = vmatpush.bf16.msra.mxu2 %v2181_v24 }
  0xb0   : > { %703 = vmatpush.bf16.msra.mxu1 %v2172_v9  ;;  %v2197_v9 = vld [vmem:[%s3023_s12 + $0x58] sm:$0xff] }
  0xb1   : > { %900 = vmatpush.bf16.msrb.mxu0 %v2189_v46 }
  0xb3   : > { %785 = vmatpush.bf16.msra.mxu2 %v2180_v25  ;;  %v995_v25 = vperm.slane %v1931_v13, 2 }
  0xb4   : > { %704 = vmatpush.bf16.msra.mxu1 %v2171_v10  ;;  %v2196_v10 = vld [vmem:[%s3023_s12 + $0x50] sm:$0xff] }
  0xb5   : > { %901 = vmatpush.bf16.msrb.mxu0 %v2188_v58 }
  0xb7   : > { %786 = vmatpush.bf16.msra.mxu2 %v2179_v26 }
  0xb8   : > { %705 = vmatpush.bf16.msra.mxu1 %v2170_v11  ;;  %v2195_v11 = vld [vmem:[%s3023_s12 + $0x48] sm:$0xff] }
  0xb9   : > { %902 = vmatpush.bf16.msrb.mxu0 %v2187_v59 }
  0xbb   : > { %787 = vmatpush.bf16.msra.mxu2 %v2178_v27  ;;  %v998_v27 = vperm.slane %v1931_v13, 3 }
  0xbd   : > { %903 = vmatpush.bf16.msrb.mxu0 %v2186_v60 }
 0x11d   : > { %v622_v16 = vpop.f32.mrf.mxu0 }
 0x11e   : > { %v630_v21 = vadd.f32 %v628_v18, %v622_v16 }
 0x125   : > { %v624_v20 = vpop.f32.mrf.mxu0 }
 0x126   : > { %v631_v22 = vadd.f32 %v629_v19, %v624_v20 }
 0x128   : > { %v632_v23 = vpack.c.bf16 %v631_v22, %v630_v21  ;;  %v930_v22 = vperm.slane %v1931_v13, 1 }
 0x12a   : > { %706 = vmatmul.bf16.vlgmr.msra.gmra.mxu1 %v632_v23 }
 0x1a7   : > { %v707_v29 = vpop.f32.mrf.mxu1 }
 0x1a8   : > { %v708_v31 = vadd.f32 %v707_v29, %v649_v30 }
 0x1aa   : > { %v712_v34 = vmax.f32 %v708_v31, 0.0 }
 0x1af   : > { %v709_v32 = vpop.f32.mrf.mxu1 }
 0x1b0   : > { %v710_v33 = vadd.f32 %v709_v32, %v649_v30 }
 0x1b2   : > { %v713_v35 = vmax.f32 %v710_v33, 0.0 }
 0x1b4   : > { %v714_v36 = vpack.c.bf16 %v713_v35, %v712_v34 }
 0x1b6   : > { %788 = vmatmul.bf16.vlgmr.msra.gmra.mxu2 %v714_v36 }
 0x239   : > { %v789_v41 = vpop.f32.mrf.mxu2 }
 0x23a   : > { %v790_v42 = vadd.f32 %v789_v41, %v731_v39 }
 0x23c   : > { %v794_v44 = vmax.f32 %v790_v42, 0.0 }
 0x23e   : > { %v797_v48 = vmul.f32 %v796_v45, %v794_v44 }
 0x240   : > { %v800_v53 = vadd.f32 %v799_v50, %v797_v48 }
 0x241   : > { %v791_v47 = vpop.f32.mrf.mxu2 }
 0x242   : > { %v792_v49 = vadd.f32 %v791_v47, %v731_v39  ;;  %v802_v55 = vmax.f32 %v800_v53, 0.0 }
 0x244   : > { %v795_v51 = vmax.f32 %v792_v49, 0.0  ;;  %v825_v3 = vmul.f32 %v824_v2, %v802_v55 }
 0x246   : > { %v798_v52 = vmul.f32 %v796_v45, %v795_v51 }
 0x248   : > { %v801_v54 = vadd.f32 %v799_v50, %v798_v52 }
 0x24a   : > { %v803_v56 = vmax.f32 %v801_v54, 0.0 }
 0x24c   : > { %v809_v57 = vpack.c.bf16 %v803_v56, %v802_v55 }
 0x24e   : > { %817 = vmatpush.bf16.msra.mxu3 %v809_v57 }
 0x251   : > { %1932 = vmatmul.msk.bf16.vlgmr.msra.gmra.mxu3 %vm609_vm0, %v3040_v4  ;;  %v826_v4 = vmul.f32 %v824_v2, %v803_v56 }
 0x252   : > { %979 = vmatpush.bf16.msrb.mxu3 %v2201_v61 }
 0x256   : > { %980 = vmatpush.bf16.msrb.mxu3 %v2200_v62 }
 0x25a   : > { %981 = vmatpush.bf16.msrb.mxu3 %v2199_v63 }
 0x25e   : > { %982 = vmatpush.bf16.msrb.mxu3 %v2198_v0 }
 0x262   : > { %983 = vmatpush.bf16.msrb.mxu3 %v2197_v9 }
 0x266   : > { %984 = vmatpush.bf16.msrb.mxu3 %v2196_v10 }
 0x26a   : > { %985 = vmatpush.bf16.msrb.mxu3 %v2195_v11 }
 0x26e   : > { %986 = vmatpush.bf16.msrb.mxu3 %v2194_v12 }
 0x2d4   : > { %v819_v1 = vpop.f32.mrf.mxu3 }
 0x2d5   : > { %v827_v6 = vadd.f32 %v825_v3, %v819_v1 }
 0x2dc   : > { %v821_v5 = vpop.f32.mrf.mxu3 }
 0x2dd   : > { %v828_v7 = vadd.f32 %v826_v4, %v821_v5 }
 0x2df   : > { %v829_v8 = vpack.c.bf16 %v828_v7, %v827_v6 }
 0x2e1   : > { %904 = vmatmul.bf16.vlgmr.msrb.gmra.mxu0 %v829_v8 }
 0x35e   : > { %v905_v14 = vpop.f32.mrf.mxu0 }
 0x35f   : > { %v906_v16 = vadd.f32 %v905_v14, %v847_v15 }
 0x361   : > { %v910_v19 = vmax.f32 %v906_v16, 0.0 }
 0x366   : > { %v907_v17 = vpop.f32.mrf.mxu0 }
 0x367   : > { %v908_v18 = vadd.f32 %v907_v17, %v847_v15 }
 0x369   : > { %v911_v20 = vmax.f32 %v908_v18, 0.0 }
 0x36b   : > { %v912_v21 = vpack.c.bf16 %v911_v20, %v910_v19 }
 0x36d   : > { %987 = vmatmul.bf16.vlgmr.msrb.gmra.mxu3 %v912_v21 }
 0x3f0   : > { %v988_v23 = vpop.f32.mrf.mxu3 }
 0x3f1   : > { %v989_v24 = vadd.f32 %v988_v23, %v930_v22 }
 0x3f3   : > { %v993_v26 = vmax.f32 %v989_v24, 0.0 }
 0x3f5   : > { %v996_v28 = vmul.f32 %v995_v25, %v993_v26 }
 0x3f7   : > { %v999_v29 = vadd.f32 %v998_v27, %v996_v28 }
 0x3f8   : > { %v990_v30 = vpop.f32.mrf.mxu3 }
 0x3f9   : > { %v1001_v31 = vmax.f32 %v999_v29, 0.0  ;;  %v991_v32 = vadd.f32 %v990_v30, %v930_v22 }
 0x3fb   : > { %v1003_v33 = vrot.slane %v1001_v31, 4  ;;  %v994_v34 = vmax.f32 %v991_v32, 0.0 }
 0x3fd   : > { %v1004_v35 = vadd.f32 %v1003_v33, %v1001_v31  ;;  %v997_v36 = vmul.f32 %v995_v25, %v994_v34 }
 0x3ff   : > { %v1005_v37 = vrot.slane %v1004_v35, 2  ;;  %v1000_v38 = vadd.f32 %v998_v27, %v997_v36 }
 0x401   : > { %v1006_v39 = vadd.f32 %v1005_v37, %v1004_v35  ;;  %v1002_v40 = vmax.f32 %v1000_v38, 0.0 }
 0x403   : > { %v1007_v41 = vrot.slane %v1006_v39, 1  ;;  %v1009_v42 = vrot.slane %v1002_v40, 4 }
 0x405   : > { %v3084_v43 = vadd.f32 %v1007_v41, %v1006_v39  ;;  %v1010_v44 = vadd.f32 %v1009_v42, %v1002_v40 }
 0x407   : > { %v1011_v45 = vrot.slane %v1010_v44, 2 }
 0x409   : > { %v1012_v46 = vadd.f32 %v1011_v45, %v1010_v44  ;;  %1018 = sbr.rel (%p1831_p4) target bundleno = 1041 (0x411), region = 100 }
 0x40b   : > { %v1013_v47 = vrot.slane %v1012_v46, 1 }
 0x40d   : > { %v3086_v48 = vadd.f32 %v1013_v47, %v1012_v46 }
 0x40e   : > { %vm1021_vm1 = vcmask 1041409  }
 0x40f   : > { %v1022_v49 = vsel %vm1021_vm1, %v3086_v48, %v3084_v43 }
 0x410   : > { %1024 = vst [vmem:[#allocation2] sm:$0x3] %v1022_v49 }
 0x411 PF: > { %s3218_s30 = sld [smem:[#allocation29_spill]] }
 0x417   : > { %p2030_p1 = scmp.ne.s32.totalorder %s3218_s30, 1 }
 0x418   : > { %s3219_s29 = sld [smem:[#allocation37_spill]] (!%p2030_p1) }
 0x419   : > { %1028 = sbr.rel (%p2030_p1) target bundleno = 2030 (0x7ee), region = 104 }
 0x41e   : > { %v2217_v50 = vld [vmem:[#allocation14 + $0x78] sm:$0xff]  ;;  %vm1071_vm2 = vcmask 1041409   ;;  %vm1363_vm3 = vcmask 1041408   ;;  %v1404_v52 = vmul.f32 %v3084_v43, %v3084_v43  ;;  %v1405_v53 = vmul.f32 %v3086_v48, %v3086_v48  ;;  %v2216_v55 = vld [vmem:[#allocation14 + $0x70] sm:$0xff]  ;;  %v3098_v57 = vld [vmem:[#allocation2] sm:$0x3] }
 0x41f   : > { %v2209_v51 = vld [vmem:[#allocation14 + $0x38] sm:$0xff]  ;;  %1123 = vmatpush.bf16.msra.mxu0 %v2217_v50  ;;  %v2208_v56 = vld [vmem:[#allocation14 + $0x30] sm:$0xff]  ;;  %v1388_v59 = vmul.f32 %v3098_v57, %v3098_v57  ;;  %v2215_v61 = vld [vmem:[#allocation14 + $0x68] sm:$0xff]  ;;  %v1048_v6 = vpack.c.bf16 %v3084_v43, %v3084_v43  ;;  %v1049_v7 = vpack.c.bf16 %v3086_v48, %v3086_v48  ;;  %v1031_v16 = vpack.c.bf16 %v3098_v57, %v3098_v57 }
 0x420   : > { %1184 = vmatpush.bf16.msra.mxu1 %v2209_v51  ;;  %v1408_v54 = vsel %vm1071_vm2, %v1405_v53, %v1404_v52  ;;  %v2225_v60 = vld [vmem:[#allocation16 + $0x38] sm:$0xff]  ;;  %v2207_v62 = vld [vmem:[#allocation14 + $0x28] sm:$0xff]  ;;  %v2214_v0 = vld [vmem:[#allocation14 + $0x60] sm:$0xff]  ;;  %vm1540_vm11 = vcmask 9216   ;;  %vm1599_vm13 = vcmask 1024  }
 0x421   : > { %v1410_v58 = vsel %vm1363_vm3, %v1408_v54, 0.0  ;;  %1266 = vmatpush.bf16.msra.mxu2 %v2225_v60  ;;  %v1389_v63 = vsel %vm1363_vm3, %v1388_v59, 0.0  ;;  %v2206_v1 = vld [vmem:[#allocation14 + $0x20] sm:$0xff]  ;;  %v2213_v2 = vld [vmem:[#allocation14 + $0x58] sm:$0xff]  ;;  %v2212_v4 = vld [vmem:[#allocation14 + $0x50] sm:$0xff]  ;;  %v1069_v10 = vunpack.c.l.b16 %v1048_v6  ;;  %v1070_v11 = vunpack.c.l.b16 %v1049_v7 }
 0x422   : > { %1411 = vadd.xlane.f32.xlu0 %v1410_v58  ;;  %v2205_v3 = vld [vmem:[#allocation14 + $0x18] sm:$0xff]  ;;  %v2204_v5 = vld [vmem:[#allocation14 + $0x10] sm:$0xff]  ;;  %v2211_v8 = vld [vmem:[#allocation14 + $0x48] sm:$0xff] }
 0x423   : > { %1124 = vmatpush.bf16.msra.mxu0 %v2216_v55  ;;  %v2203_v9 = vld [vmem:[#allocation14 + $0x8] sm:$0xff]  ;;  %v2210_v12 = vld [vmem:[#allocation14 + $0x40] sm:$0xff]  ;;  %v1072_v14 = vsel %vm1071_vm2, %v1070_v11, %v1069_v10  ;;  %v2224_v17 = vld [vmem:[#allocation16 + $0x30] sm:$0xff] }
 0x424   : > { %1185 = vmatpush.bf16.msra.mxu1 %v2208_v56  ;;  %v2202_v13 = vld [vmem:[#allocation14] sm:$0xff]  ;;  %v1073_v15 = vpack.c.b16 %v1072_v14, %v1072_v14  ;;  %v2223_v18 = vld [vmem:[#allocation16 + $0x28] sm:$0xff]  ;;  %v2221_v20 = vld [vmem:[#allocation16 + $0x18] sm:$0xff] }
 0x425   : > { %1267 = vmatpush.bf16.msra.mxu2 %v2224_v17  ;;  %v2222_v19 = vld [vmem:[#allocation16 + $0x20] sm:$0xff]  ;;  %v2220_v21 = vld [vmem:[#allocation16 + $0x10] sm:$0xff]  ;;  %v2219_v22 = vld [vmem:[#allocation16 + $0x8] sm:$0xff] }
 0x426   : > { %v2218_v23 = vld [vmem:[#allocation16] sm:$0xff]  ;;  %v2232_v59 = vld [vmem:[#allocation17 + $0x30] sm:$0xff]  ;;  %v2231_v60 = vld [vmem:[#allocation17 + $0x28] sm:$0xff] }
 0x427   : > { %1125 = vmatpush.bf16.msra.mxu0 %v2215_v61  ;;  %v2230_v61 = vld [vmem:[#allocation17 + $0x20] sm:$0xff] }
 0x428   : > { %1186 = vmatpush.bf16.msra.mxu1 %v2207_v62  ;;  %v1359_v62 = vlaneseq }
 0x429   : > { %1268 = vmatpush.bf16.msra.mxu2 %v2223_v18 }
 0x42a   : > { %1390 = vadd.xlane.f32.xlu0 %v1389_v63  ;;  %v1360_v63 = vand.u32 127, %v1359_v62 }
 0x42b   : > { %1126 = vmatpush.bf16.msra.mxu0 %v2214_v0  ;;  %v1531_v0 = vshrl.u32 %v1359_v62, 7 }
 0x42c   : > { %1187 = vmatpush.bf16.msra.mxu1 %v2206_v1  ;;  %v2229_v1 = vld [vmem:[#allocation17 + $0x18] sm:$0xff]  ;;  %vm1361_vm12 = vcmp.lt.s32.totalorder %v1360_v63, 4 }
 0x42d   : > { %1269 = vmatpush.bf16.msra.mxu2 %v2222_v19  ;;  %vm1532_vm10 = vcmp.eq.s32.totalorder %v1531_v0, %v1360_v63 }
 0x42f   : > { %1127 = vmatpush.bf16.msra.mxu0 %v2213_v2  ;;  %v2228_v2 = vld [vmem:[#allocation17 + $0x10] sm:$0xff] }
 0x430   : > { %1188 = vmatpush.bf16.msra.mxu1 %v2205_v3  ;;  %v2730_v3 = vmov 0.0  }
 0x431   : > { %1270 = vmatpush.bf16.msra.mxu2 %v2221_v20 }
 0x433   : > { %1128 = vmatpush.bf16.msra.mxu0 %v2212_v4  ;;  %v3121_v4 = vsel %vm1532_vm10, 1.0, %v2730_v3 }
 0x434   : > { %1189 = vmatpush.bf16.msra.mxu1 %v2204_v5  ;;  %v2227_v5 = vld [vmem:[#allocation17 + $0x8] sm:$0xff] }
 0x435   : > { %1271 = vmatpush.bf16.msra.mxu2 %v2220_v21 }
 0x437   : > { %1129 = vmatpush.bf16.msra.mxu0 %v2211_v8  ;;  %v1535_v8 = vsub.f32 1.0, %v3121_v4 }
 0x438   : > { %1190 = vmatpush.bf16.msra.mxu1 %v2203_v9  ;;  %v2226_v9 = vld [vmem:[#allocation17] sm:$0xff] }
 0x439   : > { %1272 = vmatpush.bf16.msra.mxu2 %v2219_v22 }
 0x43b   : > { %1130 = vmatpush.bf16.msra.mxu0 %v2210_v12 }
 0x43c   : > { %1191 = vmatpush.bf16.msra.mxu1 %v2202_v13 }
 0x43d   : > { %1273 = vmatpush.bf16.msra.mxu2 %v2218_v23 }
 0x43e   : > { %1131 = vmatmul.bf16.vlgmr.msra.gmra.mxu0 %v1073_v15 }
 0x43f   : > { %1192 = vmatmul.bf16.vlgmr.msra.gmra.mxu1 %v1031_v16 }
 0x495   : > { %v1412_v24 = vpop.xlane.xlu0 %1411 }
 0x496   : > { %v1413_v25 = vmax.f32 %v1412_v24, 1e-24 }
 0x498   : > { %2353 = vrsqrt.f32 %v1413_v25  ;;  %vm1420_vm5 = vweird.f32 %v1413_v25 }
 0x49d   : > { %v1391_v26 = vpop.xlane.xlu0 %1390 }
 0x49e   : > { %v2354_v27 = vpop.eup %2353  ;;  %v1392_v28 = vmax.f32 %v1391_v26, 1e-24 }
 0x49f   : > { %v1415_v29 = vmul.f32 %v2354_v27, %v1413_v25  ;;  %vm1421_vm4 = vweird.f32 %v2354_v27 }
 0x4a0   : > { %2355 = vrsqrt.f32 %v1392_v28  ;;  %vm1422_vm6 = vmor %vm1420_vm5, %vm1421_vm4  ;;  %vm1399_vm8 = vweird.f32 %v1392_v28 }
 0x4a1   : > { %v1416_v30 = vmul.f32 %v2354_v27, %v1415_v29 }
 0x4a3   : > { %v1417_v31 = vmul.f32 0.5, %v1416_v30 }
 0x4a5   : > { %v1418_v32 = vsub.f32 1.5, %v1417_v31 }
 0x4a6   : > { %v2356_v33 = vpop.eup %2355 }
 0x4a7   : > { %v1419_v34 = vmul.f32 %v2354_v27, %v1418_v32  ;;  %v1394_v35 = vmul.f32 %v2356_v33, %v1392_v28  ;;  %vm1400_vm7 = vweird.f32 %v2356_v33 }
 0x4a8   : > { %vm1401_vm9 = vmor %vm1399_vm8, %vm1400_vm7 }
 0x4a9   : > { %v1395_v36 = vmul.f32 %v2356_v33, %v1394_v35  ;;  %v1423_v37 = vsel %vm1422_vm6, %v2354_v27, %v1419_v34 }
 0x4aa   : > { %v1425_v38 = vrot.slane %v1423_v37, 1  ;;  %v1428_v42 = vmul.f32 %v1423_v37, %v3084_v43 }
 0x4ab   : > { %v1396_v39 = vmul.f32 0.5, %v1395_v36 }
 0x4ac   : > { %v1429_v40 = vmul.f32 %v1425_v38, %v3086_v48  ;;  %v3118_v48 = vld [vmem:[%s3219_s29] sm:$0xff] }
 0x4ad   : > { %v1397_v41 = vsub.f32 1.5, %v1396_v39  ;;  %v1197_v43 = vperm.slane %v3118_v48, 0  ;;  %v1217_v15 = vperm.slane %v3118_v48, 1  ;;  %v1297_v28 = vperm.slane %v3118_v48, 2 }
 0x4ae   : > { %v1432_v44 = vrot.slane %v1429_v40, 7 }
 0x4af   : > { %v1398_v45 = vmul.f32 %v2356_v33, %v1397_v41 }
 0x4b0   : > { %v1433_v46 = vsel %vm1071_vm2, %v1432_v44, %v1428_v42 }
 0x4b1   : > { %1450 = vmatpush.xpose.msrb.mxu0 %v1433_v46  ;;  %1524 = vmatpush.xpose.msrb.mxu2 %v1433_v46  ;;  %v1402_v47 = vsel %vm1401_vm9, %v2356_v33, %v1398_v45 }
 0x4b2   : > { %v1403_v49 = vmul.f32 %v1402_v47, %v3098_v57  ;;  %v2233_v57 = vld [vmem:[#allocation17 + $0x38] sm:$0xff] }
 0x4b3   : > { %1346 = vmatpush.bf16.msra.mxu3 %v2233_v57 }
 0x4b4   : > { %1451 = vmatmul.f32.vlgmr.msrb.gmra.mxu0 %v1403_v49  ;;  %1503 = vmatpush.xpose.msrb.mxu1 %v1403_v49 }
 0x4b7   : > { %1504 = vmatmul.f32.vlgmr.msrb.gmra.mxu1 %v1403_v49  ;;  %1347 = vmatpush.bf16.msra.mxu3 %v2232_v59 }
 0x4bb   : > { %v1132_v50 = vpop.f32.mrf.mxu0  ;;  %1348 = vmatpush.bf16.msra.mxu3 %v2231_v60 }
 0x4bc   : > { %v1193_v51 = vpop.f32.mrf.mxu1 }
 0x4bd   : > { %v1194_v52 = vadd.f32 %v1193_v51, %v1132_v50 }
 0x4bf   : > { %v1198_v53 = vadd.f32 %v1197_v43, %v1194_v52  ;;  %1349 = vmatpush.bf16.msra.mxu3 %v2230_v61 }
 0x4c1   : > { %v1199_v54 = vmax.f32 %v1198_v53, 0.0 }
 0x4c3   : > { %v1200_v55 = vpack.c.bf16 %v1199_v54, %v1199_v54  ;;  %v1134_v56 = vpop.f32.mrf.mxu0  ;;  %1350 = vmatpush.bf16.msra.mxu3 %v2229_v1 }
 0x4c4   : > { %v1195_v58 = vpop.f32.mrf.mxu1 }
 0x4c5   : > { %1274 = vmatmul.bf16.vlgmr.msra.gmra.mxu2 %v1200_v55 }
 0x4c7   : > { %1351 = vmatpush.bf16.msra.mxu3 %v2228_v2 }
 0x4cb   : > { %1352 = vmatpush.bf16.msra.mxu3 %v2227_v5 }
 0x4cf   : > { %1353 = vmatpush.bf16.msra.mxu3 %v2226_v9 }
 0x4d5   : > { %1525 = vmatmul.f32.vlgmr.msrb.gmra.mxu2 %v1433_v46 }
 0x531   : > { %v1452_v6 = vpop.f32.mrf.mxu0 }
 0x532   : > { %v3123_v7 = vmul.f32 2.0, %v1452_v6 }
 0x534   : > { %1456 = vxpose.xlu1.b32.start.end [1/1] (short) (narrow) %v3123_v7, 8  ;;  %v1505_v10 = vpop.f32.mrf.mxu1  ;;  %v1541_v26 = vsel %vm1540_vm11, %v3123_v7, -inf  ;;  %v1561_v60 = vmul.f32 %v3121_v4, %v3123_v7 }
 0x535   : > { %v1508_v11 = vmul.f32 2.0, %v1505_v10 }
 0x536   : > { %v1562_v62 = vsel %vm1540_vm11, %v1561_v60, 0.0 }
 0x537   : > { %v1536_v12 = vmul.f32 %v1535_v8, %v1508_v11 }
 0x539   : > { %v1537_v13 = vmul.f32 0.8, %v1536_v12 }
 0x53b   : > { %v1544_v14 = vsel %vm1540_vm11, %v1537_v13, -inf }
 0x53c   : > { %1545 = vmax.xlane.f32.xlu2 %v1544_v14 }
 0x548   : > { %v1275_v16 = vpop.f32.mrf.mxu2 }
 0x549   : > { %v1276_v17 = vadd.f32 %v1275_v16, %v1217_v15 }
 0x54b   : > { %v1279_v18 = vmax.f32 %v1276_v17, 0.0 }
 0x54d   : > { %v1280_v19 = vpack.c.bf16 %v1279_v18, %v1279_v18 }
 0x54f   : > { %1354 = vmatmul.bf16.vlgmr.msra.gmra.mxu3 %v1280_v19 }
 0x550   : > { %v1277_v20 = vpop.f32.mrf.mxu2 }
 0x558   : > { %v1526_v21 = vpop.f32.mrf.mxu2 }
 0x559   : > { %v1529_v22 = vmul.f32 2.0, %v1526_v21 }
 0x55b   : > { %v1538_v23 = vmul.f32 %v1535_v8, %v1529_v22 }
 0x55d   : > { %v1539_v24 = vmul.f32 0.8, %v1538_v23 }
 0x55f   : > { %v1573_v25 = vsel %vm1540_vm11, %v1539_v24, -inf }
 0x560   : > { %1574 = vmax.xlane.f32.xlu0 %v1573_v25 }
 0x594   : > { %1542 = vmax.xlane.f32.xlu1 %v1541_v26 }
 0x5af   : > { %v1546_v35 = vpop.xlane.xlu2 %1545 }
 0x5d2   : > { %v1355_v27 = vpop.f32.mrf.mxu3 }
 0x5d3   : > { %v1356_v30 = vadd.f32 %v1355_v27, %v1297_v28  ;;  %v1575_v47 = vpop.xlane.xlu0 %1574  ;;  %v2731_v27 = vmov 2.0  }
 0x5d5   : > { %v1362_v33 = vsel %vm1361_vm12, %v1356_v30, -1e+30 }
 0x5d6   : > { %v1364_v34 = vsel %vm1363_vm3, %v1362_v33, -inf }
 0x5d8   : > { %v1472_v29 = vpop.trf.xlu1 }
 0x5d9   : > { %v1570_v31 = vsel %vm1540_vm11, %v1472_v29, -inf  ;;  %v1590_v61 = vmul.f32 %v3121_v4, %v1472_v29 }
 0x5da   : > { %1571 = vmax.xlane.f32.xlu2 %v1570_v31  ;;  %v1357_v32 = vpop.f32.mrf.mxu3 }
 0x5db   : > { %v1591_v63 = vsel %vm1540_vm11, %v1590_v61, 0.0 }
 0x5e2   : > { %1365 = vmax.xlane.f32.xlu2 %v1364_v34 }
 0x607   : > { %v1543_v36 = vpop.xlane.xlu1 %1542 }
 0x608   : > { %v1547_v37 = vmax.f32 %v1543_v36, %v1546_v35 }
 0x60a   : > { %v1548_v38 = vsub.f32 %v3123_v7, %v1547_v37  ;;  %v1554_v39 = vsub.f32 %v1537_v13, %v1547_v37 }
 0x60c   : > { %v1549_v40 = vmul.f32 1.442695, %v1548_v38  ;;  %v1555_v41 = vmul.f32 1.442695, %v1554_v39 }
 0x60e   : > { %2357 = vpow2.f32 %v1549_v40 }
 0x60f   : > { %2359 = vpow2.f32 %v1555_v41 }
 0x614   : > { %v2358_v42 = vpop.eup %2357 }
 0x615   : > { %v2360_v44 = vpop.eup %2359  ;;  %v1551_v45 = vsel %vm1540_vm11, %v2358_v42, 0.0 }
 0x616   : > { %1552 = vadd.xlane.f32.xlu0 %v1551_v45  ;;  %v1557_v46 = vsel %vm1540_vm11, %v2360_v44, 0.0 }
 0x617   : > { %1558 = vadd.xlane.f32.xlu2 %v1557_v46 }
 0x64d   : > { %v1572_v49 = vpop.xlane.xlu2 %1571 }
 0x64e   : > { %v1576_v48 = vmax.f32 %v1572_v49, %v1575_v47 }
 0x650   : > { %v1577_v43 = vsub.f32 %v1472_v29, %v1576_v48  ;;  %v1583_v50 = vsub.f32 %v1539_v24, %v1576_v48 }
 0x652   : > { %v1578_v51 = vmul.f32 1.442695, %v1577_v43  ;;  %v1584_v52 = vmul.f32 1.442695, %v1583_v50 }
 0x654   : > { %2361 = vpow2.f32 %v1578_v51 }
 0x655   : > { %2363 = vpow2.f32 %v1584_v52  ;;  %v1366_v53 = vpop.xlane.xlu2 %1365 }
 0x656   : > { %v1367_v55 = vsub.f32 %v1362_v33, %v1366_v53 }
 0x658   : > { %v1368_v59 = vmul.f32 1.442695, %v1367_v55 }
 0x65a   : > { %v2362_v54 = vpop.eup %2361  ;;  %2365 = vpow2.f32 %v1368_v59 }
 0x65b   : > { %v2364_v56 = vpop.eup %2363  ;;  %v1580_v58 = vsel %vm1540_vm11, %v2362_v54, 0.0 }
 0x65c   : > { %1581 = vadd.xlane.f32.xlu0 %v1580_v58  ;;  %v1586_v57 = vsel %vm1540_vm11, %v2364_v56, 0.0 }
 0x65d   : > { %1587 = vadd.xlane.f32.xlu2 %v1586_v57 }
 0x660   : > { %v2366_v0 = vpop.eup %2365 }
 0x661   : > { %v1370_v1 = vsel %vm1363_vm3, %v2366_v0, 0.0 }
 0x664   : > { %1563 = vadd.xlane.f32.xlu0 %v1562_v62 }
 0x665   : > { %1592 = vadd.xlane.f32.xlu2 %v1591_v63 }
 0x66c   : > { %1371 = vadd.xlane.f32.xlu0 %v1370_v1 }
 0x689   : > { %v1553_v2 = vpop.xlane.xlu0 %1552 }
 0x68a   : > { %v1559_v3 = vpop.xlane.xlu2 %1558 }
 0x68b   : > { %v1560_v5 = vadd.f32 %v1559_v3, %v1553_v2 }
 0x68d   : > { %2367 = vlog2.f32 %v1560_v5 }
 0x693   : > { %v2368_v4 = vpop.eup %2367 }
 0x694   : > { %v1567_v10 = vmul.f32 0.6931472, %v2368_v4 }
 0x6cf   : > { %v1582_v6 = vpop.xlane.xlu0 %1581 }
 0x6d0   : > { %v1588_v8 = vpop.xlane.xlu2 %1587 }
 0x6d1   : > { %v1589_v7 = vadd.f32 %v1588_v8, %v1582_v6 }
 0x6d3   : > { %2369 = vlog2.f32 %v1589_v7 }
 0x6d7   : > { %v1564_v9 = vpop.xlane.xlu0 %1563 }
 0x6d8   : > { %v1565_v11 = vsub.f32 %v1564_v9, %v1547_v37  ;;  %v1593_v12 = vpop.xlane.xlu2 %1592 }
 0x6d9   : > { %v2370_v13 = vpop.eup %2369  ;;  %v1594_v14 = vsub.f32 %v1593_v12, %v1576_v48 }
 0x6da   : > { %v1596_v15 = vmul.f32 0.6931472, %v2370_v13  ;;  %v1568_v16 = vsub.f32 %v1565_v11, %v1567_v10 }
 0x6dc   : > { %v1597_v17 = vsub.f32 %v1594_v14, %v1596_v15  ;;  %v1569_v18 = vsub.f32 0.0, %v1568_v16 }
 0x6de   : > { %v1600_v19 = vsel %vm1599_vm13, %v1569_v18, 0.0  ;;  %v1598_v20 = vsub.f32 0.0, %v1597_v17 }
 0x6df   : > { %v1372_v21 = vpop.xlane.xlu0 %1371  ;;  %1601 = vadd.xlane.f32.xlu2 %v1600_v19 }
 0x6e0   : > { %2371 = vlog2.f32 %v1372_v21  ;;  %v1619_v22 = vsel %vm1599_vm13, %v1598_v20, 0.0 }
 0x6e1   : > { %1620 = vadd.xlane.f32.xlu0 %v1619_v22  ;;  %2373 = vrcp.f32 %v2731_v27 }
 0x6e6   : > { %v2372_v23 = vpop.eup %2371 }
 0x6e7   : > { %v1374_v24 = vmul.f32 0.6931472, %v2372_v23  ;;  %v2374_v28 = vpop.eup %2373 }
 0x6e8   : > { %v1611_v29 = vmul.f32 2.0, %v2374_v28  ;;  %vm1615_vm14 = vweird.f32 %v2374_v28 }
 0x6e9   : > { %v1375_v25 = vsub.f32 %v1367_v55, %v1374_v24 }
 0x6ea   : > { %v1612_v30 = vsub.f32 1.0, %v1611_v29 }
 0x6eb   : > { %v1376_v26 = vsel %vm1363_vm3, %v1375_v25, -inf }
 0x6ec   : > { %1377 = vmax.xlane.f32.xlu2 %v1376_v26  ;;  %v1613_v36 = vmul.f32 %v2374_v28, %v1612_v30 }
 0x6ee   : > { %v1614_v41 = vadd.f32 %v2374_v28, %v1613_v36 }
 0x6f0   : > { %v1616_v46 = vsel %vm1615_vm14, %v2374_v28, %v1614_v41 }
 0x752   : > { %v1602_v31 = vpop.xlane.xlu2 %1601 }
 0x753   : > { %v1603_v32 = vrot.slane %v1602_v31, 4 }
 0x754   : > { %v1621_v33 = vpop.xlane.xlu0 %1620 }
 0x755   : > { %v1604_v34 = vadd.f32 %v1603_v32, %v1602_v31  ;;  %v1622_v35 = vrot.slane %v1621_v33, 4 }
 0x757   : > { %v1605_v37 = vrot.slane %v1604_v34, 2  ;;  %v1623_v38 = vadd.f32 %v1622_v35, %v1621_v33 }
 0x759   : > { %v1624_v39 = vrot.slane %v1623_v38, 2  ;;  %v1606_v40 = vadd.f32 %v1605_v37, %v1604_v34 }
 0x75b   : > { %v1607_v42 = vrot.slane %v1606_v40, 1  ;;  %v1625_v44 = vadd.f32 %v1624_v39, %v1623_v38 }
 0x75d   : > { %v1608_v45 = vadd.f32 %v1607_v42, %v1606_v40  ;;  %v1626_v47 = vrot.slane %v1625_v44, 1 }
 0x75f   : > { %2234 = vpush %v1608_v45  ;;  %v1378_v49 = vpop.xlane.xlu2 %1377  ;;  %v1627_v48 = vadd.f32 %v1626_v47, %v1625_v44 }
 0x760   : > { %2236 = vpush %v1616_v46  ;;  %v1379_v43 = vsub.f32 %v1375_v25, %v1378_v49 }
 0x761   : > { %2238 = vpush %v1627_v48 }
 0x762   : > { %v1380_v50 = vmul.f32 1.442695, %v1379_v43 }
 0x764   : > { %2375 = vpow2.f32 %v1380_v50 }
 0x76a   : > { %v2376_v51 = vpop.eup %2375 }
 0x76b   : > { %v1382_v52 = vsel %vm1363_vm3, %v2376_v51, 0.0 }
 0x76c   : > { %1383 = vadd.xlane.f32.xlu0 %v1382_v52 }
 0x790   : > { %s2235_s15 = spop %2234 }
 0x791   : > { %s2237_s23 = spop %2236 }
 0x792   : > { %s2239_s20 = spop %2238  ;;  %s1618_s11 = smul.f32 %s2237_s23, %s2235_s15 }
 0x793   : > { %s1637_s9 = smul.f32 %s2239_s20, %s2237_s23 }
 0x795   : > { %s1638_s22 = sadd.f32 %s1637_s9, %s1618_s11 }
 0x797   : > { %s1639_s24 = smul.f32 0.5, %s1638_s22 }
 0x799   : > { %v1640_v58 = vstv %s1639_s24 }
 0x7df   : > { %v1384_v53 = vpop.xlane.xlu0 %1383 }
 0x7e0   : > { %2377 = vlog2.f32 %v1384_v53 }
 0x7e6   : > { %v2378_v54 = vpop.eup %2377 }
 0x7e7   : > { %v1386_v55 = vmul.f32 0.6931472, %v2378_v54 }
 0x7e9   : > { %v1387_v56 = vsub.f32 %v1379_v43, %v1386_v55 }
 0x7eb   : > { %v1641_v57 = vadd.f32 %v1640_v58, %v1387_v56 }
 0x7ed   : > { %1642 = vst [vmem:[#allocation19] sm:$0x3] %v1641_v57 }
 0x7ee PF: > { %s3220_s17 = sld [smem:[#allocation29_spill]]  ;;  %s2732_s19 = smov [#allocation19]  }
 0x7ef   : > { %s1649_s16 = sshll.u32 %s2732_s19, 4  ;;  %s3221_s12 = sld [smem:[#allocation38_spill]]  ;;  %s1650_s16 = int_to_ptr.vmem [resolvable:$true] %s1649_s16 }
 0x7f4   : > { %p2308_p4 = scmp.eq.s32.totalorder %s3220_s17, 1 }
 0x7f5   : > { %s1651_s18 = sshll.u32 %s3221_s12, 4  ;;  %s1652_s18 = int_to_ptr.hbm [resolvable:$true] %s1651_s18 }
 0x7f6   : > { %2267 = dma.vmem_to_hbm [thread:$0]  (%p2308_p4), %s1650_s16, 32, %s1652_s18, [#allocation5]  }
 0x7f7   : > { %2703 = dma.done.wait (%p2308_p4), [#allocation5], 32  }
 0x7f8   : > { %2705 = vsyncadd (%p2308_p4), [#allocation5], 4294967264 }
 0x7f9 PF: > { %s3222_s16 = sld [smem:[#allocation32_spill]] }
 0x7fa   : > { %s3223_s13 = sld [smem:[#allocation27_spill]] }
 0x7fb   : > { %s3224_s14 = sld [smem:[#allocation28_spill]] }
 0x7fc   : > { %s3225_s15 = sld [smem:[#allocation33_spill]] }
 0x7ff   : > { %p30_p5 = scmp.ge.s32.totalorder %s3222_s16, 4  }
 0x801   :  { %32 = sbr.rel (!%p30_p5) target bundleno = 16 (0x10), region = 174 }
 0x806   :  { %1665 = vsyncpa [#allocation4], 1 }
 0x807   :  { %1667 = vsyncpa [#allocation4 + $0x1], 1 }
 0x808   :  { %1668 = vsyncpa [#allocation9], 1 }
 0x809   :  { %1670 = vsyncpa [#allocation9 + $0x1], 1 }
 0x80a   :  { %1671 = vsyncpa [#allocation12], 1 }
 0x80b   :  { %1673 = vsyncpa [#allocation12 + $0x1], 1 }
 0x80c   :  { %1674 = vsyncpa [#allocation15], 1 }
 0x80d   :  { %1675 = vsyncpa [#allocation18], 1 }
 0x80e   :  { %1676 = vsyncpa [#allocation5], 1 }
 0x80f   :  { %1678 = vsyncpa [#allocation5 + $0x1], 1 }
 0x810   :  { %1679 = vsyncpa [#allocation6], 1 }
 0x811   :  { %1681 = vsyncpa [#allocation6 + $0x1], 1 }

</bundles_post_ra>
